<compile_context>
chip_gen: v5e
topology: v5e:2x2
jax: 0.10.0
libtpu: 0.0.40
codegen_flags: <defaults>
</compile_context>

<pallas_src>
import functools
import math

import jax
import jax.numpy as jnp
from jax.experimental import pallas as pl
from jax.experimental.pallas import tpu as pltpu

_CompilerParams = getattr(pltpu, "CompilerParams", None) or getattr(
    pltpu, "TPUCompilerParams")


# ---------------------------------------------------------------------------
# Hardware-aware helpers
# ---------------------------------------------------------------------------

def _physical_vmem_bytes():
    """Per-core VMEM capacity; conservative 64 MiB (v7x) if the query fails."""
    try:
        info = pltpu.get_tpu_info()
        for name in ("vmem_capacity_bytes", "vmem_size_bytes", "vmem_bytes"):
            v = getattr(info, name, None)
            if v:
                return int(v)
    except Exception:
        pass
    return 64 << 20


def _clamp_vmem(need_bytes):
    cap = int(_physical_vmem_bytes() * 0.85)
    return int(min(max(need_bytes, 16 << 20), cap))


def _seq_tile(n, mlp_dim=0):
    """Sequence tile: as large as possible, generation / mlp_dim aware."""
    if mlp_dim >= 2048 and _physical_vmem_bytes() <= (64 << 20):
        candidates = (256, 128)      # (tile, mlp) f32 GELU hidden dominates
    else:
        candidates = (512, 256, 128)
    for t in candidates:
        if n >= t and n % t == 0:
            return t
    return n                          # tiny N: one full tile


def _weight_spec(shape, index_map, single_buffer):
    """Grid-invariant weight spec; optionally single-buffered (halves VMEM)."""
    if single_buffer:
        return pl.BlockSpec(shape, index_map, pipeline_mode=pl.Buffered(1))
    return pl.BlockSpec(shape, index_map)


# ---------------------------------------------------------------------------
# Shared in-kernel helpers
# ---------------------------------------------------------------------------

def _layernorm(v, g, b, eps=1e-6):
    """f32 LayerNorm over the last axis; g/b are (1, E)."""
    mu = jnp.mean(v, axis=-1, keepdims=True)
    var = jnp.mean(jnp.square(v - mu), axis=-1, keepdims=True)
    return (v - mu) * jax.lax.rsqrt(var + eps) * g + b


# ---------------------------------------------------------------------------
# Kernels
# ---------------------------------------------------------------------------

def embed_kernel(patches_ref, w_ref, b_ref, pos_ref, out_ref):
    """Patch embedding tile: (tn, P) @ (P, E) + bias + position embedding."""
    p = patches_ref[0]                                            # (tn, P) bf16
    y = jnp.dot(p, w_ref[...], preferred_element_type=jnp.float32)
    y = y + b_ref[...].astype(jnp.float32)                        # (1, E) bcast
    y = y + pos_ref[...].astype(jnp.float32)                      # (tn, E)
    out_ref[0] = y.astype(out_ref.dtype)


def block_kernel(x_ref, vec_ref, b1_ref, wq_ref, wkv_ref, wo_ref, w1_ref,
                 w2_ref, out_ref, k_scr, v_scr, *, num_heads, seq_tile,
                 exact_gelu):
    """One full TransformerBlock (pre-LN MHA + residual, pre-LN MLP + residual)
    for one (batch, query-tile) grid point.

    vec_ref : (9, E) rows = [ln1_g, ln1_b, bq(*1/sqrt(hd)), bk, bv, bo,
                             ln2_g, ln2_b, b2]
    wq      : (E, E)   (pre-scaled by 1/sqrt(hd))
    wkv     : (E, 2E)  columns = [Wk | Wv]
    wo      : (E, E)
    w1      : (E, mlp) ; b1_ref (1, mlp) ; w2 (mlp, E)
    k_scr/v_scr : (N, E) VMEM scratch, filled at query-tile 0 of each batch.
    """
    cdt = out_ref.dtype
    H = num_heads
    tq = seq_tile
    N = x_ref.shape[1]
    E = x_ref.shape[2]
    hd = E // H
    t = pl.program_id(1)

    vec = vec_ref[...].astype(jnp.float32)                        # (9, E)
    ln1_g, ln1_b = vec[0:1], vec[1:2]
    bq, bk, bv, bo = vec[2:3], vec[3:4], vec[4:5], vec[5:6]
    ln2_g, ln2_b, b2 = vec[6:7], vec[7:8], vec[8:9]

    # ---- K / V for the whole sequence, once per batch item ----------------
    @pl.when(t == 0)
    def _():
        xf = x_ref[0].astype(jnp.float32)                         # (N, E)
        xnf = _layernorm(xf, ln1_g, ln1_b).astype(cdt)
        kv = jnp.dot(xnf, wkv_ref[...],
                     preferred_element_type=jnp.float32)          # (N, 2E)
        k_scr[...] = (kv[:, :E] + bk).astype(cdt)
        v_scr[...] = (kv[:, E:] + bv).astype(cdt)

    # ---- query tile --------------------------------------------------------
    row0 = pl.multiple_of(t * tq, tq)
    x = x_ref[0, pl.ds(row0, tq), :].astype(jnp.float32)          # (tq, E)
    xn = _layernorm(x, ln1_g, ln1_b).astype(cdt)
    q = (jnp.dot(xn, wq_ref[...], preferred_element_type=jnp.float32)
         + bq).astype(cdt)                                        # (tq, E)
    k = k_scr[...]
    v = v_scr[...]

    # ---- per-head attention (static lane slices, ctx concatenated) --------
    ctx_parts = []
    for h in range(H):
        sl = slice(h * hd, (h + 1) * hd)
        s = jax.lax.dot_general(q[:, sl], k[:, sl],
                                (((1,), (1,)), ((), ())),
                                preferred_element_type=jnp.float32)  # (tq, N)
        s = s - jnp.max(s, axis=-1, keepdims=True)
        es = jnp.exp(s)
        inv_denom = pl.reciprocal(jnp.sum(es, axis=-1, keepdims=True),
                                  approx=True)                    # (tq, 1)
        ctx_h = jnp.dot(es.astype(cdt), v[:, sl],
                        preferred_element_type=jnp.float32)       # (tq, hd)
        ctx_parts.append((ctx_h * inv_denom).astype(cdt))
    ctx = jnp.concatenate(ctx_parts, axis=-1)                     # (tq, E)

    attn = jnp.dot(ctx, wo_ref[...],
                   preferred_element_type=jnp.float32) + bo       # (tq, E)
    y1 = x + attn                                                 # residual 1

    # ---- MLP ---------------------------------------------------------------
    xn2 = _layernorm(y1, ln2_g, ln2_b).astype(cdt)
    hid = jnp.dot(xn2, w1_ref[...], preferred_element_type=jnp.float32)
    hid = hid + b1_ref[...].astype(jnp.float32)                   # (1, mlp)
    if exact_gelu:
        hid = jax.nn.gelu(hid, approximate=False)                 # torch nn.GELU
    else:
        hid = jax.nn.gelu(hid, approximate=True)                  # tanh fallback
    y2 = jnp.dot(hid.astype(cdt), w2_ref[...],
                 preferred_element_type=jnp.float32) + b2
    out_ref[0] = (y1 + y2).astype(cdt)                            # residual 2


# ---------------------------------------------------------------------------
# pallas_call wrappers
# ---------------------------------------------------------------------------

def make_embed_call(B, N, P, E, dtype, single_buffer_weights):
    tn = _seq_tile(N)
    isz = jnp.dtype(dtype).itemsize
    wbuf = 1 if single_buffer_weights else 2
    tiled = tn * P + tn * E + tn * E                # patches + pos + out tile
    weights = P * E + E
    need = (2 * tiled + wbuf * weights) * isz + 3 * tn * E * 4 + (4 << 20)
    return pl.pallas_call(
        embed_kernel,
        out_shape=jax.ShapeDtypeStruct((B, N, E), dtype),
        grid=(B, N // tn),
        in_specs=[
            pl.BlockSpec((1, tn, P), lambda b, t: (b, t, 0)),     # patches
            _weight_spec((P, E), lambda b, t: (0, 0), single_buffer_weights),
            _weight_spec((1, E), lambda b, t: (0, 0), single_buffer_weights),
            pl.BlockSpec((tn, E), lambda b, t: (t, 0)),           # position emb
        ],
        out_specs=pl.BlockSpec((1, tn, E), lambda b, t: (b, t, 0)),
        compiler_params=_CompilerParams(
            dimension_semantics=("parallel", "parallel"),
            vmem_limit_bytes=_clamp_vmem(need)),
    )


def make_block_call(B, N, E, H, mlp_dim, dtype, single_buffer_weights,
                    exact_gelu):
    tq = _seq_tile(N, mlp_dim)
    isz = jnp.dtype(dtype).itemsize
    wbuf = 1 if single_buffer_weights else 2

    tiled = N * E + tq * E                               # x_full + out tile
    weights = 9 * E + mlp_dim + 4 * E * E + 2 * E * mlp_dim
    scratch = 2 * N * E
    f32_work = (3 * N * E) + (6 * tq * E) + (2 * tq * N) + (2 * tq * mlp_dim)
    need = (2 * tiled + wbuf * weights + scratch) * isz + f32_work * 4 + (4 << 20)

    kern = functools.partial(block_kernel, num_heads=H, seq_tile=tq,
                             exact_gelu=exact_gelu)
    sbw = single_buffer_weights
    return pl.pallas_call(
        kern,
        out_shape=jax.ShapeDtypeStruct((B, N, E), dtype),
        grid=(B, N // tq),
        in_specs=[
            pl.BlockSpec((1, N, E), lambda b, t: (b, 0, 0)),      # hidden (full)
            _weight_spec((9, E), lambda b, t: (0, 0), sbw),       # packed vectors
            _weight_spec((1, mlp_dim), lambda b, t: (0, 0), sbw), # b1
            _weight_spec((E, E), lambda b, t: (0, 0), sbw),       # wq (pre-scaled)
            _weight_spec((E, 2 * E), lambda b, t: (0, 0), sbw),   # [wk | wv]
            _weight_spec((E, E), lambda b, t: (0, 0), sbw),       # wo
            _weight_spec((E, mlp_dim), lambda b, t: (0, 0), sbw), # w1
            _weight_spec((mlp_dim, E), lambda b, t: (0, 0), sbw), # w2
        ],
        out_specs=pl.BlockSpec((1, tq, E), lambda b, t: (b, t, 0)),
        scratch_shapes=[pltpu.VMEM((N, E), dtype),                # K scratch
                        pltpu.VMEM((N, E), dtype)],               # V scratch
        compiler_params=_CompilerParams(
            dimension_semantics=("parallel", "arbitrary"),
            vmem_limit_bytes=_clamp_vmem(need)),
    )


# ---------------------------------------------------------------------------
# Plain-JAX glue: patch extraction (Conv3d with kernel == stride)
# ---------------------------------------------------------------------------

def extract_patches(x, patch_size):
    """(B, C, D, H, W) -> (B, n_patches, C*p^3); d-major patch order matches
    conv_out.flatten(2).transpose(-1, -2); feature order matches the flattened
    Conv3d weight (C, pd, ph, pw)."""
    B, C, D, H, W = x.shape
    p = patch_size
    x = x.reshape(B, C, D // p, p, H // p, p, W // p, p)
    x = x.transpose(0, 2, 4, 6, 1, 3, 5, 7)
    return x.reshape(B, (D // p) * (H // p) * (W // p), C * p * p * p)


# ---------------------------------------------------------------------------
# Parameters (deterministic synthetic init, torch-equivalent layout)
# ---------------------------------------------------------------------------

def init_params(key, *, input_dim, embed_dim, patch_size, n_patches, mlp_dim,
                num_heads, num_layers, dtype=jnp.bfloat16):
    P = input_dim * patch_size ** 3
    E = embed_dim
    hd = E // num_heads
    inv_sqrt_hd = 1.0 / math.sqrt(hd)
    scale = 0.02
    keys = jax.random.split(key, 2 + num_layers)

    def nrm(k, shape):
        return scale * jax.random.normal(k, shape, jnp.float32)

    params = {
        # Conv3d weight (E, C, p, p, p) laid out as (C*p^3, E) for matmul.
        "patch_w": nrm(keys[0], (P, E)).astype(dtype),
        "patch_b": nrm(keys[1], (1, E)).astype(dtype),
        "pos": jnp.zeros((n_patches, E), dtype),      # torch.zeros init
        "layers": [],
    }
    for i in range(num_layers):
        k = jax.random.split(keys[2 + i], 12)
        ln1_g = jnp.ones((E,), jnp.float32)
        ln1_b = jnp.zeros((E,), jnp.float32)
        ln2_g = jnp.ones((E,), jnp.float32)
        ln2_b = jnp.zeros((E,), jnp.float32)
        wq = nrm(k[0], (E, E)) * inv_sqrt_hd          # 1/sqrt(hd) folded in
        bq = nrm(k[1], (E,)) * inv_sqrt_hd
        wk = nrm(k[2], (E, E))
        bk = nrm(k[3], (E,))
        wv = nrm(k[4], (E, E))
        bv = nrm(k[5], (E,))
        wo = nrm(k[6], (E, E))
        bo = nrm(k[7], (E,))
        w1 = nrm(k[8], (E, mlp_dim))
        b1 = nrm(k[9], (1, mlp_dim))
        w2 = nrm(k[10], (mlp_dim, E))
        b2 = nrm(k[11], (E,))
        params["layers"].append({
            "vecs": jnp.stack([ln1_g, ln1_b, bq, bk, bv, bo,
                               ln2_g, ln2_b, b2]).astype(dtype),   # (9, E)
            "b1": b1.astype(dtype),
            "wq": wq.astype(dtype),
            "wkv": jnp.concatenate([wk, wv], axis=1).astype(dtype),  # (E, 2E)
            "wo": wo.astype(dtype),
            "w1": w1.astype(dtype),
            "w2": w2.astype(dtype),
        })
    return params


# ---------------------------------------------------------------------------
# Transformer forward
# ---------------------------------------------------------------------------

def transformer_forward(x, params, *, patch_size, num_heads, extract_layers,
                        compute_dtype=jnp.bfloat16,
                        single_buffer_weights=True, exact_gelu=True):
    patches = extract_patches(x, patch_size).astype(compute_dtype)  # (B, N, P)
    B, N, P = patches.shape
    E = params["patch_w"].shape[1]
    mlp_dim = params["layers"][0]["w1"].shape[1]

    embed_call = make_embed_call(B, N, P, E, compute_dtype,
                                 single_buffer_weights)
    hidden = embed_call(patches, params["patch_w"], params["patch_b"],
                        params["pos"])

    block_call = make_block_call(B, N, E, num_heads, mlp_dim, compute_dtype,
                                 single_buffer_weights, exact_gelu)
    outs = []
    for depth, lyr in enumerate(params["layers"]):
        hidden = block_call(hidden, lyr["vecs"], lyr["b1"], lyr["wq"],
                            lyr["wkv"], lyr["wo"], lyr["w1"], lyr["w2"])
        if depth + 1 in extract_layers:
            outs.append(hidden)
    return outs


# ---------------------------------------------------------------------------
# Demo
# ---------------------------------------------------------------------------

if __name__ == "__main__":
    B, C = 2, 4
    cube_size = (16, 16, 16)
    patch_size = 4
    embed_dim = 128            # keeps the store path lane/vreg dense
    num_heads = 4
    num_layers = 2
    mlp_dim = 256              # stands in for cfg.unetr.mlp_dim (external cfg)
    extract_layers = [1, 2]

    n_patches = (cube_size[0] * cube_size[1] * cube_size[2]) // (patch_size ** 3)

    key = jax.random.PRNGKey(0)
    kx, kp = jax.random.split(key)
    x = jax.random.normal(kx, (B, C) + cube_size, dtype=jnp.float32)

    params = init_params(
        kp, input_dim=C, embed_dim=embed_dim, patch_size=patch_size,
        n_patches=n_patches, mlp_dim=mlp_dim, num_heads=num_heads,
        num_layers=num_layers)

    def run(single_buffer, exact):
        return transformer_forward(
            x, params, patch_size=patch_size, num_heads=num_heads,
            extract_layers=extract_layers,
            single_buffer_weights=single_buffer, exact_gelu=exact)

    # Preferred config first; graceful fallbacks if pl.Buffered(1) or the
    # exact (erf) GELU is unsupported by the installed Pallas/Mosaic version.
    outs, last_err = None, None
    for cfg in ((True, True), (False, True), (True, False), (False, False)):
        try:
            outs = run(*cfg)
            for o in outs:
                jax.block_until_ready(o)
            break
        except Exception as e:          # fall back to the next configuration
            last_err, outs = e, None
    if outs is None:
        raise last_err

    assert len(outs) == len(extract_layers)
    assert all(o.shape == (B, n_patches, embed_dim) for o in outs)
    print("KERNEL_OK")
</pallas_src>

<mosaic_0001>
module attributes {stable_mosaic.version = 11 : i64} {
  func.func @embed_kernel(%arg0: i32, %arg1: i32, %arg2: memref<1x64x256xbf16, #tpu.memory_space<vmem>>, %arg3: memref<256x128xbf16, #tpu.memory_space<vmem>>, %arg4: memref<1x128xbf16, #tpu.memory_space<vmem>>, %arg5: memref<64x128xbf16, #tpu.memory_space<vmem>>, %arg6: memref<1x64x128xbf16, #tpu.memory_space<vmem>>) attributes {dimension_semantics = [#tpu.dimension_semantics<parallel>, #tpu.dimension_semantics<parallel>], iteration_bounds = array<i64: 2, 1>, scalar_prefetch = 0 : i64, scratch_operands = 0 : i64, tpu.core_type = #tpu.core_type<tc>, window_params = [{transform_indices = @transform_0, window_bounds = array<i64: 1, 64, 256>}, {pipeline_mode = #tpu.pipeline_mode<synchronous>, transform_indices = @transform_1, window_bounds = array<i64: 256, 128>}, {pipeline_mode = #tpu.pipeline_mode<synchronous>, transform_indices = @transform_2, window_bounds = array<i64: 1, 128>}, {transform_indices = @transform_3, window_bounds = array<i64: 64, 128>}, {transform_indices = @transform_4, window_bounds = array<i64: 1, 64, 128>}]} {
    %c0 = arith.constant 0 : index
    %c0_0 = arith.constant 0 : index
    %c0_1 = arith.constant 0 : index
    %0 = vector.load %arg2[%c0, %c0_0, %c0_1] : memref<1x64x256xbf16, #tpu.memory_space<vmem>>, vector<1x64x256xbf16>
    %1 = vector.shape_cast %0 : vector<1x64x256xbf16> to vector<64x256xbf16>
    %c0_2 = arith.constant 0 : index
    %c0_3 = arith.constant 0 : index
    %2 = vector.load %arg3[%c0_2, %c0_3] : memref<256x128xbf16, #tpu.memory_space<vmem>>, vector<256x128xbf16>
    %cst = arith.constant dense<0.000000e+00> : vector<64x128xf32>
    %3 = tpu.matmul %1, %2, %cst {dimension_numbers = #tpu.dot_dimension_numbers<[1], [0], [0], [1], [0, 0, 1, 1], [], []>} : vector<64x256xbf16>, vector<256x128xbf16>, vector<64x128xf32> -> vector<64x128xf32>
    %c0_4 = arith.constant 0 : index
    %c0_5 = arith.constant 0 : index
    %4 = vector.load %arg4[%c0_4, %c0_5] : memref<1x128xbf16, #tpu.memory_space<vmem>>, vector<1x128xbf16>
    %5 = arith.extf %4 : vector<1x128xbf16> to vector<1x128xf32>
    %6 = vector.broadcast %5 : vector<1x128xf32> to vector<64x128xf32>
    %7 = arith.addf %3, %6 : vector<64x128xf32>
    %c0_6 = arith.constant 0 : index
    %c0_7 = arith.constant 0 : index
    %8 = vector.load %arg5[%c0_6, %c0_7] : memref<64x128xbf16, #tpu.memory_space<vmem>>, vector<64x128xbf16>
    %9 = arith.extf %8 : vector<64x128xbf16> to vector<64x128xf32>
    %10 = arith.addf %7, %9 : vector<64x128xf32>
    %11 = arith.truncf %10 : vector<64x128xf32> to vector<64x128xbf16>
    %c0_8 = arith.constant 0 : index
    %c0_9 = arith.constant 0 : index
    %c0_10 = arith.constant 0 : index
    %12 = vector.load %arg6[%c0_8, %c0_9, %c0_10] : memref<1x64x128xbf16, #tpu.memory_space<vmem>>, vector<1x64x128xbf16>
    %13 = vector.shape_cast %12 : vector<1x64x128xbf16> to vector<64x128xbf16>
    %14 = vector.shape_cast %11 : vector<64x128xbf16> to vector<1x64x128xbf16>
    tpu.vector_store %arg6[%c0_8, %c0_9, %c0_10], %14 {strides = array<i32>} : memref<1x64x128xbf16, #tpu.memory_space<vmem>>, vector<1x64x128xbf16>,
    return
  }
  func.func @transform_0(%arg0: i32, %arg1: i32) -> (i32, i32, i32) {
    %c0_i32 = arith.constant 0 : i32
    %c0_i32_0 = arith.constant 0 : i32
    return %arg0, %arg1, %c0_i32 : i32, i32, i32
  }
  func.func @transform_1(%arg0: i32, %arg1: i32) -> (i32, i32) {
    %c0_i32 = arith.constant 0 : i32
    %c0_i32_0 = arith.constant 0 : i32
    %c0_i32_1 = arith.constant 0 : i32
    return %c0_i32, %c0_i32_0 : i32, i32
  }
  func.func @transform_2(%arg0: i32, %arg1: i32) -> (i32, i32) {
    %c0_i32 = arith.constant 0 : i32
    %c0_i32_0 = arith.constant 0 : i32
    %c0_i32_1 = arith.constant 0 : i32
    return %c0_i32, %c0_i32_0 : i32, i32
  }
  func.func @transform_3(%arg0: i32, %arg1: i32) -> (i32, i32) {
    %c0_i32 = arith.constant 0 : i32
    %c0_i32_0 = arith.constant 0 : i32
    return %arg1, %c0_i32 : i32, i32
  }
  func.func @transform_4(%arg0: i32, %arg1: i32) -> (i32, i32, i32) {
    %c0_i32 = arith.constant 0 : i32
    %c0_i32_0 = arith.constant 0 : i32
    return %arg0, %arg1, %c0_i32 : i32, i32, i32
  }
}

module attributes {stable_mosaic.version = 11 : i64} {
  func.func @embed_kernel(%arg0: i32, %arg1: i32, %arg2: memref<1x64x256xbf16, #tpu.memory_space<vmem>>, %arg3: memref<256x128xbf16, #tpu.memory_space<vmem>>, %arg4: memref<1x128xbf16, #tpu.memory_space<vmem>>, %arg5: memref<64x128xbf16, #tpu.memory_space<vmem>>, %arg6: memref<1x64x128xbf16, #tpu.memory_space<vmem>>) attributes {dimension_semantics = [#tpu.dimension_semantics<parallel>, #tpu.dimension_semantics<parallel>], iteration_bounds = array<i64: 2, 1>, scalar_prefetch = 0 : i64, scratch_operands = 0 : i64, tpu.core_type = #tpu.core_type<tc>, window_params = [{transform_indices = @transform_0, window_bounds = array<i64: 1, 64, 256>}, {pipeline_mode = #tpu.pipeline_mode<synchronous>, transform_indices = @transform_1, window_bounds = array<i64: 256, 128>}, {pipeline_mode = #tpu.pipeline_mode<synchronous>, transform_indices = @transform_2, window_bounds = array<i64: 1, 128>}, {transform_indices = @transform_3, window_bounds = array<i64: 64, 128>}, {transform_indices = @transform_4, window_bounds = array<i64: 1, 64, 128>}]} {
    %c0 = arith.constant 0 : index
    %c0_0 = arith.constant 0 : index
    %c0_1 = arith.constant 0 : index
    %0 = vector.load %arg2[%c0, %c0_0, %c0_1] : memref<1x64x256xbf16, #tpu.memory_space<vmem>>, vector<1x64x256xbf16>
    %1 = vector.shape_cast %0 : vector<1x64x256xbf16> to vector<64x256xbf16>
    %c0_2 = arith.constant 0 : index
    %c0_3 = arith.constant 0 : index
    %2 = vector.load %arg3[%c0_2, %c0_3] : memref<256x128xbf16, #tpu.memory_space<vmem>>, vector<256x128xbf16>
    %cst = arith.constant dense<0.000000e+00> : vector<64x128xf32>
    %3 = tpu.matmul %1, %2, %cst {dimension_numbers = #tpu.dot_dimension_numbers<[1], [0], [0], [1], [0, 0, 1, 1], [], []>} : vector<64x256xbf16>, vector<256x128xbf16>, vector<64x128xf32> -> vector<64x128xf32>
    %c0_4 = arith.constant 0 : index
    %c0_5 = arith.constant 0 : index
    %4 = vector.load %arg4[%c0_4, %c0_5] : memref<1x128xbf16, #tpu.memory_space<vmem>>, vector<1x128xbf16>
    %5 = arith.extf %4 : vector<1x128xbf16> to vector<1x128xf32>
    %6 = vector.broadcast %5 : vector<1x128xf32> to vector<64x128xf32>
    %7 = arith.addf %3, %6 : vector<64x128xf32>
    %c0_6 = arith.constant 0 : index
    %c0_7 = arith.constant 0 : index
    %8 = vector.load %arg5[%c0_6, %c0_7] : memref<64x128xbf16, #tpu.memory_space<vmem>>, vector<64x128xbf16>
    %9 = arith.extf %8 : vector<64x128xbf16> to vector<64x128xf32>
    %10 = arith.addf %7, %9 : vector<64x128xf32>
    %11 = arith.truncf %10 : vector<64x128xf32> to vector<64x128xbf16>
    %c0_8 = arith.constant 0 : index
    %c0_9 = arith.constant 0 : index
    %c0_10 = arith.constant 0 : index
    %12 = vector.load %arg6[%c0_8, %c0_9, %c0_10] : memref<1x64x128xbf16, #tpu.memory_space<vmem>>, vector<1x64x128xbf16>
    %13 = vector.shape_cast %12 : vector<1x64x128xbf16> to vector<64x128xbf16>
    %14 = vector.shape_cast %11 : vector<64x128xbf16> to vector<1x64x128xbf16>
    tpu.vector_store %arg6[%c0_8, %c0_9, %c0_10], %14 {strides = array<i32>} : memref<1x64x128xbf16, #tpu.memory_space<vmem>>, vector<1x64x128xbf16>,
    return
  }
  func.func @transform_0(%arg0: i32, %arg1: i32) -> (i32, i32, i32) {
    %c0_i32 = arith.constant 0 : i32
    %c0_i32_0 = arith.constant 0 : i32
    return %arg0, %arg1, %c0_i32 : i32, i32, i32
  }
  func.func @transform_1(%arg0: i32, %arg1: i32) -> (i32, i32) {
    %c0_i32 = arith.constant 0 : i32
    %c0_i32_0 = arith.constant 0 : i32
    %c0_i32_1 = arith.constant 0 : i32
    return %c0_i32, %c0_i32_0 : i32, i32
  }
  func.func @transform_2(%arg0: i32, %arg1: i32) -> (i32, i32) {
    %c0_i32 = arith.constant 0 : i32
    %c0_i32_0 = arith.constant 0 : i32
    %c0_i32_1 = arith.constant 0 : i32
    return %c0_i32, %c0_i32_0 : i32, i32
  }
  func.func @transform_3(%arg0: i32, %arg1: i32) -> (i32, i32) {
    %c0_i32 = arith.constant 0 : i32
    %c0_i32_0 = arith.constant 0 : i32
    return %arg1, %c0_i32 : i32, i32
  }
  func.func @transform_4(%arg0: i32, %arg1: i32) -> (i32, i32, i32) {
    %c0_i32 = arith.constant 0 : i32
    %c0_i32_0 = arith.constant 0 : i32
    return %arg0, %arg1, %c0_i32 : i32, i32, i32
  }
}

module attributes {stable_mosaic.version = 11 : i64} {
  func.func @embed_kernel(%arg0: i32, %arg1: i32, %arg2: memref<1x64x256xbf16, #tpu.memory_space<vmem>>, %arg3: memref<256x128xbf16, #tpu.memory_space<vmem>>, %arg4: memref<1x128xbf16, #tpu.memory_space<vmem>>, %arg5: memref<64x128xbf16, #tpu.memory_space<vmem>>, %arg6: memref<1x64x128xbf16, #tpu.memory_space<vmem>>) attributes {dimension_semantics = [#tpu.dimension_semantics<parallel>, #tpu.dimension_semantics<parallel>], iteration_bounds = array<i64: 2, 1>, scalar_prefetch = 0 : i64, scratch_operands = 0 : i64, tpu.core_type = #tpu.core_type<tc>, window_params = [{transform_indices = @transform_0, window_bounds = array<i64: 1, 64, 256>}, {pipeline_mode = #tpu.pipeline_mode<synchronous>, transform_indices = @transform_1, window_bounds = array<i64: 256, 128>}, {pipeline_mode = #tpu.pipeline_mode<synchronous>, transform_indices = @transform_2, window_bounds = array<i64: 1, 128>}, {transform_indices = @transform_3, window_bounds = array<i64: 64, 128>}, {transform_indices = @transform_4, window_bounds = array<i64: 1, 64, 128>}]} {
    %c0 = arith.constant 0 : index
    %c0_0 = arith.constant 0 : index
    %c0_1 = arith.constant 0 : index
    %0 = vector.load %arg2[%c0, %c0_0, %c0_1] : memref<1x64x256xbf16, #tpu.memory_space<vmem>>, vector<1x64x256xbf16>
    %1 = vector.shape_cast %0 : vector<1x64x256xbf16> to vector<64x256xbf16>
    %c0_2 = arith.constant 0 : index
    %c0_3 = arith.constant 0 : index
    %2 = vector.load %arg3[%c0_2, %c0_3] : memref<256x128xbf16, #tpu.memory_space<vmem>>, vector<256x128xbf16>
    %cst = arith.constant dense<0.000000e+00> : vector<64x128xf32>
    %3 = tpu.matmul %1, %2, %cst {dimension_numbers = #tpu.dot_dimension_numbers<[1], [0], [0], [1], [0, 0, 1, 1], [], []>} : vector<64x256xbf16>, vector<256x128xbf16>, vector<64x128xf32> -> vector<64x128xf32>
    %c0_4 = arith.constant 0 : index
    %c0_5 = arith.constant 0 : index
    %4 = vector.load %arg4[%c0_4, %c0_5] : memref<1x128xbf16, #tpu.memory_space<vmem>>, vector<1x128xbf16>
    %5 = arith.extf %4 : vector<1x128xbf16> to vector<1x128xf32>
    %6 = vector.broadcast %5 : vector<1x128xf32> to vector<64x128xf32>
    %7 = arith.addf %3, %6 : vector<64x128xf32>
    %c0_6 = arith.constant 0 : index
    %c0_7 = arith.constant 0 : index
    %8 = vector.load %arg5[%c0_6, %c0_7] : memref<64x128xbf16, #tpu.memory_space<vmem>>, vector<64x128xbf16>
    %9 = arith.extf %8 : vector<64x128xbf16> to vector<64x128xf32>
    %10 = arith.addf %7, %9 : vector<64x128xf32>
    %11 = arith.truncf %10 : vector<64x128xf32> to vector<64x128xbf16>
    %c0_8 = arith.constant 0 : index
    %c0_9 = arith.constant 0 : index
    %c0_10 = arith.constant 0 : index
    %12 = vector.load %arg6[%c0_8, %c0_9, %c0_10] : memref<1x64x128xbf16, #tpu.memory_space<vmem>>, vector<1x64x128xbf16>
    %13 = vector.shape_cast %12 : vector<1x64x128xbf16> to vector<64x128xbf16>
    %14 = vector.shape_cast %11 : vector<64x128xbf16> to vector<1x64x128xbf16>
    tpu.vector_store %arg6[%c0_8, %c0_9, %c0_10], %14 {strides = array<i32>} : memref<1x64x128xbf16, #tpu.memory_space<vmem>>, vector<1x64x128xbf16>,
    return
  }
  func.func @transform_0(%arg0: i32, %arg1: i32) -> (i32, i32, i32) {
    %c0_i32 = arith.constant 0 : i32
    %c0_i32_0 = arith.constant 0 : i32
    return %arg0, %arg1, %c0_i32 : i32, i32, i32
  }
  func.func @transform_1(%arg0: i32, %arg1: i32) -> (i32, i32) {
    %c0_i32 = arith.constant 0 : i32
    %c0_i32_0 = arith.constant 0 : i32
    %c0_i32_1 = arith.constant 0 : i32
    return %c0_i32, %c0_i32_0 : i32, i32
  }
  func.func @transform_2(%arg0: i32, %arg1: i32) -> (i32, i32) {
    %c0_i32 = arith.constant 0 : i32
    %c0_i32_0 = arith.constant 0 : i32
    %c0_i32_1 = arith.constant 0 : i32
    return %c0_i32, %c0_i32_0 : i32, i32
  }
  func.func @transform_3(%arg0: i32, %arg1: i32) -> (i32, i32) {
    %c0_i32 = arith.constant 0 : i32
    %c0_i32_0 = arith.constant 0 : i32
    return %arg1, %c0_i32 : i32, i32
  }
  func.func @transform_4(%arg0: i32, %arg1: i32) -> (i32, i32, i32) {
    %c0_i32 = arith.constant 0 : i32
    %c0_i32_0 = arith.constant 0 : i32
    return %arg0, %arg1, %c0_i32 : i32, i32, i32
  }
}

module attributes {stable_mosaic.version = 11 : i64} {
  func.func @embed_kernel(%arg0: i32, %arg1: i32, %arg2: memref<1x64x256xbf16, #tpu.memory_space<vmem>>, %arg3: memref<256x128xbf16, #tpu.memory_space<vmem>>, %arg4: memref<1x128xbf16, #tpu.memory_space<vmem>>, %arg5: memref<64x128xbf16, #tpu.memory_space<vmem>>, %arg6: memref<1x64x128xbf16, #tpu.memory_space<vmem>>) attributes {dimension_semantics = [#tpu.dimension_semantics<parallel>, #tpu.dimension_semantics<parallel>], iteration_bounds = array<i64: 2, 1>, scalar_prefetch = 0 : i64, scratch_operands = 0 : i64, tpu.core_type = #tpu.core_type<tc>, window_params = [{transform_indices = @transform_0, window_bounds = array<i64: 1, 64, 256>}, {pipeline_mode = #tpu.pipeline_mode<synchronous>, transform_indices = @transform_1, window_bounds = array<i64: 256, 128>}, {pipeline_mode = #tpu.pipeline_mode<synchronous>, transform_indices = @transform_2, window_bounds = array<i64: 1, 128>}, {transform_indices = @transform_3, window_bounds = array<i64: 64, 128>}, {transform_indices = @transform_4, window_bounds = array<i64: 1, 64, 128>}]} {
    %c0 = arith.constant 0 : index
    %c0_0 = arith.constant 0 : index
    %c0_1 = arith.constant 0 : index
    %0 = vector.load %arg2[%c0, %c0_0, %c0_1] : memref<1x64x256xbf16, #tpu.memory_space<vmem>>, vector<1x64x256xbf16>
    %1 = vector.shape_cast %0 : vector<1x64x256xbf16> to vector<64x256xbf16>
    %c0_2 = arith.constant 0 : index
    %c0_3 = arith.constant 0 : index
    %2 = vector.load %arg3[%c0_2, %c0_3] : memref<256x128xbf16, #tpu.memory_space<vmem>>, vector<256x128xbf16>
    %cst = arith.constant dense<0.000000e+00> : vector<64x128xf32>
    %3 = tpu.matmul %1, %2, %cst {dimension_numbers = #tpu.dot_dimension_numbers<[1], [0], [0], [1], [0, 0, 1, 1], [], []>} : vector<64x256xbf16>, vector<256x128xbf16>, vector<64x128xf32> -> vector<64x128xf32>
    %c0_4 = arith.constant 0 : index
    %c0_5 = arith.constant 0 : index
    %4 = vector.load %arg4[%c0_4, %c0_5] : memref<1x128xbf16, #tpu.memory_space<vmem>>, vector<1x128xbf16>
    %5 = arith.extf %4 : vector<1x128xbf16> to vector<1x128xf32>
    %6 = vector.broadcast %5 : vector<1x128xf32> to vector<64x128xf32>
    %7 = arith.addf %3, %6 : vector<64x128xf32>
    %c0_6 = arith.constant 0 : index
    %c0_7 = arith.constant 0 : index
    %8 = vector.load %arg5[%c0_6, %c0_7] : memref<64x128xbf16, #tpu.memory_space<vmem>>, vector<64x128xbf16>
    %9 = arith.extf %8 : vector<64x128xbf16> to vector<64x128xf32>
    %10 = arith.addf %7, %9 : vector<64x128xf32>
    %11 = arith.truncf %10 : vector<64x128xf32> to vector<64x128xbf16>
    %c0_8 = arith.constant 0 : index
    %c0_9 = arith.constant 0 : index
    %c0_10 = arith.constant 0 : index
    %12 = vector.load %arg6[%c0_8, %c0_9, %c0_10] : memref<1x64x128xbf16, #tpu.memory_space<vmem>>, vector<1x64x128xbf16>
    %13 = vector.shape_cast %12 : vector<1x64x128xbf16> to vector<64x128xbf16>
    %14 = vector.shape_cast %11 : vector<64x128xbf16> to vector<1x64x128xbf16>
    tpu.vector_store %arg6[%c0_8, %c0_9, %c0_10], %14 {strides = array<i32>} : memref<1x64x128xbf16, #tpu.memory_space<vmem>>, vector<1x64x128xbf16>,
    return
  }
  func.func @transform_0(%arg0: i32, %arg1: i32) -> (i32, i32, i32) {
    %c0_i32 = arith.constant 0 : i32
    %c0_i32_0 = arith.constant 0 : i32
    return %arg0, %arg1, %c0_i32 : i32, i32, i32
  }
  func.func @transform_1(%arg0: i32, %arg1: i32) -> (i32, i32) {
    %c0_i32 = arith.constant 0 : i32
    %c0_i32_0 = arith.constant 0 : i32
    %c0_i32_1 = arith.constant 0 : i32
    return %c0_i32, %c0_i32_0 : i32, i32
  }
  func.func @transform_2(%arg0: i32, %arg1: i32) -> (i32, i32) {
    %c0_i32 = arith.constant 0 : i32
    %c0_i32_0 = arith.constant 0 : i32
    %c0_i32_1 = arith.constant 0 : i32
    return %c0_i32, %c0_i32_0 : i32, i32
  }
  func.func @transform_3(%arg0: i32, %arg1: i32) -> (i32, i32) {
    %c0_i32 = arith.constant 0 : i32
    %c0_i32_0 = arith.constant 0 : i32
    return %arg1, %c0_i32 : i32, i32
  }
  func.func @transform_4(%arg0: i32, %arg1: i32) -> (i32, i32, i32) {
    %c0_i32 = arith.constant 0 : i32
    %c0_i32_0 = arith.constant 0 : i32
    return %arg0, %arg1, %c0_i32 : i32, i32, i32
  }
}

</mosaic_0001>

<bundles_post_ra>
// kernel: tpu_custom_call.1
= control target key start
LH: loop header
LB: loop body
LE: loop exit
PB: predicated region body
PF: predicated region fallthrough
CT: control target
= control target key end

     0   :  { %s1366_s0 = inlined_call_operand.hbm [shape: bf16[2,64,256], index: 0, kind: input, shape index: {}]   ;;  %s1367_s1 = inlined_call_operand.hbm [shape: bf16[256,128], index: 1, kind: input, shape index: {}]   ;;  %s1368_s2 = inlined_call_operand.vmem [shape: bf16[1,128], index: 2, kind: input, shape index: {}]   ;;  %s1369_s3 = inlined_call_operand.hbm [shape: bf16[64,128], index: 3, kind: input, shape index: {}]   ;;  %s1370_s4 = inlined_call_operand.hbm [shape: bf16[2,64,128], index: 4, kind: output, shape index: {}]  }
   0x1   :  { %1371 = sst [smem:[#allocation12_spill]] %s1367_s1 }
   0x2   :  { %1372 = sst [smem:[#allocation13_spill]] %s1369_s3 }
   0x3   :  { %9 = vsyncpa [#allocation3], 0 }
   0x4   :  { %11 = vsyncpa [#allocation3 + $0x1], 0 }
   0x5   :  { %12 = vsyncpa [#allocation6], 0 }
   0x6   :  { %13 = vsyncpa [#allocation4], 0 }
   0x7   :  { %15 = vsyncpa [#allocation4 + $0x1], 0  ;;  %s1183_s15 = smov 0   ;;  %s1185_s16 = smov 0  }
   0x8   :  { %s1187_s17 = smov 0   ;;  %s1189_s18 = smov 0  }
   0x9   :  { %s1191_s19 = smov 0   ;;  %s1193_s20 = smov 0  }
   0xa LB: > { %s684_s21 = sadd.s32 4294967295, %s1148_s20   ;;  %s685_s22 = sadd.s32 4294967294, %s1148_s20   ;;  %s1148_s20 = sphi %s1193_s20, %s21_s20   ;;  %s1144_s19 = sphi %s1191_s19, %s1386_s19   ;;  %s1140_s18 = sphi %s1189_s18, %s1385_s18   ;;  %s1136_s17 = sphi %s1187_s17, %s1384_s17   ;;  %s1132_s16 = sphi %s1185_s16, %s1383_s16   ;;  %s1128_s15 = sphi %s1183_s15, %s1382_s15  }
   0xb   : > { %p55_p0 = scmp.ne.s32.totalorder %s1132_s16, %s1128_s15  ;;  %p1217_p1 = scmp.eq.s32.totalorder %s684_s21, 0 }
   0xc   : > { %p1221_p2 = scmp.eq.s32.totalorder %s684_s21, 1  ;;  %p155_p3 = scmp.eq.s32.totalorder %s685_s22, 1 }
   0xd   : > { %p1227_p4 = por %p1217_p1, %p55_p0  ;;  %p686_p5 = scmp.ge.s32.totalorder %s1148_s20, 1 }
   0xe   : > { %p1232_p6 = por %p155_p3, %p55_p0  ;;  %p162_p7 = scmp.lt.s32.totalorder %s1148_s20, 3 }
   0xf   : > { %s1377_s1 = sld [smem:[#allocation12_spill]]  ;;  %s1150_s5 = smov [#allocation5]  }
  0x10   : > { %p1240_p8 = pnand %p686_p5, %p162_p7  ;;  %s175_s6 = sshll.u32 %s1150_s5, 4  ;;  %s176_s6 = int_to_ptr.vmem [resolvable:$true] %s175_s6 }
  0x11   : > { %p689_p11 = scmp.ge.s32.totalorder %s1148_s20, 2  ;;  %s1379_s3 = sld [smem:[#allocation13_spill]] }
  0x12   : > { %p895_p9 = pneg %p1240_p8  ;;  %s1151_s10 = smov 64  }
  0x13   : > { %s1152_s11 = smov 4   ;;  %s1153_s12 = smov [#allocation7]  }
  0x14   : > { %p896_p10 = pnand %p895_p9, %p1217_p1  ;;  %s195_s13 = sshll.u32 %s1153_s12, 4  ;;  %s196_s13 = int_to_ptr.vmem [resolvable:$true] %s195_s13 }
  0x15   : > { %s173_s29 = sshll.u32 %s1377_s1, 4  ;;  %s33_s14 = sadd.s32 1, %s1144_s19  ;;  %s174_s29 = int_to_ptr.hbm [resolvable:$true] %s173_s29 }
  0x16   : > { %898 = dma.hbm_to_vmem [thread:$0]  (!%p896_p10), %s174_s29, 2048, %s176_s6, [#allocation6], %s1151_s10, %s1151_s10, %s1152_s11  }
  0x17   : > { %s193_s9 = sshll.u32 %s1379_s3, 4  ;;  %s42_s21 = sadd.s32 1, %s1136_s17  ;;  %s194_s9 = int_to_ptr.hbm [resolvable:$true] %s193_s9 }
  0x18   : > { %901 = dma.hbm_to_vmem [thread:$0]  (!%p896_p10), %s194_s9, 512, %s196_s13, [#allocation6], %s1151_s10, %s1151_s10, %s1152_s11  }
  0x19   : > { %p35_p12 = scmp.ge.s32.totalorder %s33_s14, 2  ;;  %p49_p13 = scmp.ne.s32.totalorder %s1136_s17, %s1132_s16 }
  0x1a   : > { %p50_p0 = scmp.eq.s32.totalorder %s1148_s20, 0  ;;  %p912_p3 = scmp.lt.s32.totalorder %s1148_s20, 2 }
  0x1b   : > { %s1388_s14 = smov (%p35_p12, %s33_s14), 0  ;;  %p1266_p7 = por %p1221_p2, %p49_p13 }
  0x1c   : > { %p1260_p5 = por %p50_p0, %p49_p13  ;;  %s37_s28 = ssub.s32 %s1144_s19, %s1388_s14 }
  0x1d   : > { %s209_s29 = sand.u32 1, %s1136_s17   ;;  %p40_p9 = scmp.eq.s32.totalorder %s37_s28, 0 }
  0x1e   : > { %s690_s5 = sshll.u32 %s209_s29, 6  ;;  %s799_s6 = sshll.u32 %s1144_s19, 6 }
  0x1f   : > { %s1275_s7 = scalar_select %p40_p9, %s1136_s17, %s42_s21  }
  0x20   : > { %s221_s10 = scalar_lea.hbm %s1366_s0, %s799_s6  ;;  %s213_s12 = scalar_lea.vmem [#allocation2], %s690_s5 }
  0x21   : > { %s222_s11 = sshll.u32 %s221_s10, 4  ;;  %s224_s13 = sshll.u32 %s213_s12, 4  ;;  %s223_s11 = int_to_ptr.hbm [resolvable:$true] %s222_s11  ;;  %s225_s13 = int_to_ptr.vmem [resolvable:$true] %s224_s13 }
  0x22   : > { %p903_p2 = pnand %p912_p3, %p1260_p5  ;;  %s210_s24 = scalar_lea.sflag [#allocation3], %s209_s29 }
  0x23   : > { %s1154_s1 = smov 128   ;;  %s1155_s3 = smov 8  }
  0x24   : > { %905 = dma.hbm_to_vmem [thread:$0]  (!%p903_p2), %s223_s11, 1024, %s225_s13, %s210_s24, %s1154_s1, %s1154_s1, %s1155_s3  }
  0x25   : > { %236 = sbr.rel (%p1240_p8) target bundleno = 245 (0xf5), region = 36  ;;  %s1287_s21 = sand.u32 (!%p1240_p8), 1, %s1132_s16  }
  0x26   : > { %s694_s28 = sshll.u32 (!%p1240_p8), %s1287_s21, 6  ;;  %s239_s5 = scalar_lea.sflag (!%p1240_p8), [#allocation3], %s1287_s21 }
  0x27   : > { %s1291_s6 = scalar_lea.vmem (!%p1240_p8), [#allocation2], %s694_s28 }
  0x2a   : > { %1115 = dma.done.wait (%p1227_p4), %s239_s5, 1024  }
  0x2b   : > { %1117 = vsyncadd (%p1227_p4), %s239_s5, 4294966272 }
  0x2c   : > { %1119 = dma.done.wait (%p1217_p1), [#allocation6], 2560  }
  0x2d   : > { %1121 = vsyncadd (%p1217_p1), [#allocation6], 4294964736  ;;  %v815_v0 = vld [vmem:[#allocation5 + $0x38] sm:$0xff]  ;;  %v814_v2 = vld [vmem:[#allocation5 + $0x30] sm:$0xff]  ;;  %s697_s23 = sshll.u32 %s1287_s21, 5  ;;  %s824_s30 = sshll.u32 %s1140_s18, 5 }
  0x2e   : > { %v823_v1 = vld [vmem:[#allocation5 + $0x78] sm:$0xff]  ;;  %460 = vmatpush.bf16.msra.mxu0 %v815_v0  ;;  %867 = vmatpush.bf16.msra.mxu2 %v815_v0  ;;  %v822_v3 = vld [vmem:[#allocation5 + $0x70] sm:$0xff]  ;;  %v813_v4 = vld [vmem:[#allocation5 + $0x28] sm:$0xff]  ;;  %s1321_s25 = scalar_lea.vmem [#allocation8], %s697_s23  ;;  %s572_s8 = scalar_lea.hbm %s1370_s4, %s824_s30 }
  0x2f   : > { %489 = vmatpush.bf16.msra.mxu1 %v823_v1  ;;  %875 = vmatpush.bf16.msra.mxu3 %v823_v1  ;;  %v821_v5 = vld [vmem:[#allocation5 + $0x68] sm:$0xff]  ;;  %v812_v6 = vld [vmem:[#allocation5 + $0x20] sm:$0xff]  ;;  %v811_v8 = vld [vmem:[#allocation5 + $0x18] sm:$0xff]  ;;  %s573_s9 = sshll.u32 %s1321_s25, 4  ;;  %s575_s18 = sshll.u32 %s572_s8, 4  ;;  %s574_s9 = int_to_ptr.vmem [resolvable:$true] %s573_s9  ;;  %s576_s18 = int_to_ptr.hbm [resolvable:$true] %s575_s18 }
  0x30   : > { %v820_v7 = vld [vmem:[#allocation5 + $0x60] sm:$0xff]  ;;  %v819_v9 = vld [vmem:[#allocation5 + $0x58] sm:$0xff]  ;;  %v810_v10 = vld [vmem:[#allocation5 + $0x10] sm:$0xff]  ;;  %s559_s10 = scalar_lea.sflag [#allocation4], %s1287_s21  ;;  %s1076_s11 = sshra.s32 %s576_s18, 4  ;;  %s1077_s11 = int_to_ptr.hbm [resolvable:$true] %s1076_s11 }
  0x31   : > { %v818_v11 = vld [vmem:[#allocation5 + $0x50] sm:$0xff]  ;;  %v809_v12 = vld [vmem:[#allocation5 + $0x8] sm:$0xff]  ;;  %v808_v14 = vld [vmem:[#allocation5] sm:$0xff]  ;;  %s1078_s12 = scalar_lea.hbm %s1077_s11, 32  ;;  %s1082_s28 = scalar_lea.hbm %s1370_s4, 64 }
  0x32   : > { %461 = vmatpush.bf16.msra.mxu0 %v814_v2  ;;  %868 = vmatpush.bf16.msra.mxu2 %v814_v2  ;;  %v817_v13 = vld [vmem:[#allocation5 + $0x48] sm:$0xff]  ;;  %v816_v15 = vld [vmem:[#allocation5 + $0x40] sm:$0xff]  ;;  %v708_v28 = vld [vmem:[%s1291_s6 + $0x10] sm:$0xf]  ;;  %p1079_p1 = scmp.ne.s32.totalorder %s1077_s11, %s1078_s12  ;;  %p1083_p10 = scmp.lt.s32.totalorder %s1077_s11, %s1370_s4 }
  0x33   : > { %490 = vmatpush.bf16.msra.mxu1 %v822_v3  ;;  %876 = vmatpush.bf16.msra.mxu3 %v822_v3  ;;  %v700_v16 = vld [vmem:[%s1291_s6] sm:$0xf]  ;;  %v801_v17 = vld [vmem:[%s1291_s6 + $0x4] sm:$0xf0]  ;;  %v800_v20 = vld [vmem:[%s1291_s6 + $0x4] sm:$0xf]  ;;  %p1084_p12 = scmp.lt.s32.totalorder %s1082_s28, %s1078_s12 }
  0x34   : > { %v716_v18 = vld [vmem:[%s1291_s6 + $0x20] sm:$0xf]  ;;  %v805_v19 = vld [vmem:[%s1291_s6 + $0x24] sm:$0xf0]  ;;  %v702_v21 = vld [vmem:[%s1291_s6 + $0x8] sm:$0xf0]  ;;  %v701_v24 = vor.u32 %v801_v17, %v700_v16  ;;  %p1080_p4 = pnand %p1079_p1, %p1266_p7 }
  0x35   : > { %v804_v22 = vld [vmem:[%s1291_s6 + $0x24] sm:$0xf]  ;;  %v718_v23 = vld [vmem:[%s1291_s6 + $0x28] sm:$0xf0]  ;;  %v717_v25 = vor.u32 %v805_v19, %v716_v18  ;;  %v705_v26 = vor.u32 %v800_v20, %v702_v21  ;;  %v803_v29 = vld [vmem:[%s1291_s6 + $0x14] sm:$0xf0]  ;;  %p1085_p13 = por %p1084_p12, %p1083_p10 }
  0x36   : > { %462 = vmatpush.bf16.msra.mxu0 %v813_v4  ;;  %869 = vmatpush.bf16.msra.mxu2 %v813_v4  ;;  %v721_v27 = vor.u32 %v804_v22, %v718_v23  ;;  %v724_v30 = vld [vmem:[%s1291_s6 + $0x30] sm:$0xf]  ;;  %v807_v31 = vld [vmem:[%s1291_s6 + $0x34] sm:$0xf0]  ;;  %v802_v32 = vld [vmem:[%s1291_s6 + $0x14] sm:$0xf]  ;;  %v709_v36 = vor.u32 %v803_v29, %v708_v28  ;;  %p1081_p8 = pneg %p1080_p4 }
  0x37   : > { %491 = vmatpush.bf16.msra.mxu1 %v821_v5  ;;  %877 = vmatpush.bf16.msra.mxu3 %v821_v5  ;;  %v710_v33 = vld [vmem:[%s1291_s6 + $0x18] sm:$0xf0]  ;;  %v806_v34 = vld [vmem:[%s1291_s6 + $0x34] sm:$0xf]  ;;  %v725_v37 = vor.u32 %v807_v31, %v724_v30  ;;  %v321_v40 = vld [vmem:[%s1368_s2] sm:$0x1] }
  0x38   : > { %v726_v35 = vld [vmem:[%s1291_s6 + $0x38] sm:$0xf0]  ;;  %v713_v38 = vor.u32 %v802_v32, %v710_v33  ;;  %v322_v41 = vunpack.c.l.bf16 %v321_v40  ;;  %v826_v46 = vld [vmem:[#allocation7] sm:$0xff]   ;;  %v862_v56 = vld [vmem:[#allocation7 + $0x10] sm:$0xff]   ;;  %p1086_p0 = pnand %p1085_p13, %p1081_p8 }
  0x39   : > { %v729_v39 = vor.u32 %v806_v34, %v726_v35  ;;  %v827_v51 = vunpack.c.l.bf16 %v826_v46  ;;  %v828_v54 = vunpack.c.h.bf16 %v826_v46  ;;  %v835_v60 = vunpack.c.l.bf16 %v862_v56  ;;  %v863_v20 = vld [vmem:[#allocation7 + $0x18] sm:$0xff]  }
  0x3a   : > { %463 = vmatpush.bf16.msra.mxu0 %v812_v6  ;;  %870 = vmatpush.bf16.msra.mxu2 %v812_v6  ;;  %v323_v43 = vperm.slane %v322_v41, 0  ;;  %v836_v2 = vunpack.c.h.bf16 %v862_v56  ;;  %v840_v29 = vunpack.c.h.bf16 %v863_v20 }
  0x3b   : > { %492 = vmatpush.bf16.msra.mxu1 %v820_v7  ;;  %878 = vmatpush.bf16.msra.mxu3 %v820_v7 }
  0x3e   : > { %464 = vmatpush.bf16.msra.mxu0 %v811_v8  ;;  %871 = vmatpush.bf16.msra.mxu2 %v811_v8 }
  0x3f   : > { %493 = vmatpush.bf16.msra.mxu1 %v819_v9  ;;  %879 = vmatpush.bf16.msra.mxu3 %v819_v9 }
  0x42   : > { %465 = vmatpush.bf16.msra.mxu0 %v810_v10  ;;  %872 = vmatpush.bf16.msra.mxu2 %v810_v10  ;;  %v861_v10 = vld [vmem:[#allocation7 + $0x8] sm:$0xff]  }
  0x43   : > { %494 = vmatpush.bf16.msra.mxu1 %v818_v11  ;;  %880 = vmatpush.bf16.msra.mxu3 %v818_v11  ;;  %v832_v17 = vunpack.c.h.bf16 %v861_v10 }
  0x46   : > { %466 = vmatpush.bf16.msra.mxu0 %v809_v12  ;;  %873 = vmatpush.bf16.msra.mxu2 %v809_v12 }
  0x47   : > { %495 = vmatpush.bf16.msra.mxu1 %v817_v13  ;;  %881 = vmatpush.bf16.msra.mxu3 %v817_v13 }
  0x4a   : > { %467 = vmatpush.bf16.msra.mxu0 %v808_v14  ;;  %874 = vmatpush.bf16.msra.mxu2 %v808_v14 }
  0x4b   : > { %496 = vmatpush.bf16.msra.mxu1 %v816_v15  ;;  %882 = vmatpush.bf16.msra.mxu3 %v816_v15  ;;  %v831_v15 = vunpack.c.l.bf16 %v861_v10 }
  0x4d   : > { %468 = vmatmul.bf16.vlgmr.msra.gmra.mxu0 %v701_v24  ;;  %478 = vmatmul.bf16.vlgmr.msra.gmra.mxu2 %v717_v25  ;;  %v839_v24 = vunpack.c.l.bf16 %v863_v20 }
  0x4e   : > { %497 = vmatmul.bf16.vlgmr.msra.gmra.mxu1 %v705_v26  ;;  %507 = vmatmul.bf16.vlgmr.msra.gmra.mxu3 %v721_v27 }
  0x5d   : > { %473 = vmatmul.bf16.gmra.mxu0 %v709_v36  ;;  %483 = vmatmul.bf16.gmra.mxu2 %v725_v37 }
  0x5e   : > { %502 = vmatmul.bf16.gmra.mxu1 %v713_v38  ;;  %512 = vmatmul.bf16.gmra.mxu3 %v729_v39 }
  0xca   : > { %v469_v42 = vpop.f32.mrf.mxu0 }
  0xcb   : > { %v498_v44 = vpop.f32.mrf.mxu1  ;;  %v470_v45 = vadd.f32 %v469_v42, %v323_v43 }
  0xcd   : > { %v499_v50 = vadd.f32 %v498_v44, %v470_v45 }
  0xcf   : > { %v534_v58 = vadd.f32 %v827_v51, %v499_v50 }
  0xd0   : > { %v479_v47 = vpop.f32.mrf.mxu2 }
  0xd1   : > { %v508_v48 = vpop.f32.mrf.mxu3  ;;  %v480_v55 = vadd.f32 %v479_v47, %v323_v43 }
  0xd2   : > { %v471_v49 = vpop.f32.mrf.mxu0 }
  0xd3   : > { %v472_v52 = vadd.f32 %v471_v49, %v323_v43  ;;  %v500_v53 = vpop.f32.mrf.mxu1  ;;  %v509_v62 = vadd.f32 %v508_v48, %v480_v55 }
  0xd5   : > { %v501_v57 = vadd.f32 %v500_v53, %v472_v52  ;;  %v538_v6 = vadd.f32 %v835_v60, %v509_v62 }
  0xd7   : > { %v535_v59 = vadd.f32 %v828_v54, %v501_v57 }
  0xd8   : > { %v481_v61 = vpop.f32.mrf.mxu2 }
  0xd9   : > { %v844_v63 = vpack.c.bf16 %v535_v59, %v534_v58  ;;  %v482_v0 = vadd.f32 %v481_v61, %v323_v43  ;;  %v510_v1 = vpop.f32.mrf.mxu3 }
  0xda   : > { %v474_v3 = vpop.f32.mrf.mxu0 }
  0xdb   : > { %845 = vst [vmem:[%s1321_s25] sm:$0xff] %v844_v63   ;;  %v511_v4 = vadd.f32 %v510_v1, %v482_v0  ;;  %v503_v5 = vpop.f32.mrf.mxu1  ;;  %v475_v9 = vadd.f32 %v474_v3, %v323_v43 }
  0xdd   : > { %v539_v7 = vadd.f32 %v836_v2, %v511_v4  ;;  %v504_v14 = vadd.f32 %v503_v5, %v475_v9 }
  0xdf   : > { %v854_v8 = vpack.c.bf16 %v539_v7, %v538_v6  ;;  %v536_v22 = vadd.f32 %v831_v15, %v504_v14 }
  0xe0   : > { %v484_v11 = vpop.f32.mrf.mxu2 }
  0xe1   : > { %865 = vst [vmem:[%s1321_s25 + $0x10] sm:$0xff] %v854_v8   ;;  %v513_v12 = vpop.f32.mrf.mxu3  ;;  %v485_v19 = vadd.f32 %v484_v11, %v323_v43 }
  0xe2   : > { %v476_v13 = vpop.f32.mrf.mxu0 }
  0xe3   : > { %v477_v16 = vadd.f32 %v476_v13, %v323_v43  ;;  %v505_v18 = vpop.f32.mrf.mxu1  ;;  %v514_v26 = vadd.f32 %v513_v12, %v485_v19 }
  0xe5   : > { %v506_v21 = vadd.f32 %v505_v18, %v477_v16  ;;  %v540_v32 = vadd.f32 %v839_v24, %v514_v26 }
  0xe7   : > { %v537_v23 = vadd.f32 %v832_v17, %v506_v21 }
  0xe8   : > { %v486_v25 = vpop.f32.mrf.mxu2 }
  0xe9   : > { %v849_v27 = vpack.c.bf16 %v537_v23, %v536_v22  ;;  %v487_v28 = vadd.f32 %v486_v25, %v323_v43  ;;  %v515_v30 = vpop.f32.mrf.mxu3 }
  0xeb   : > { %864 = vst [vmem:[%s1321_s25 + $0x8] sm:$0xff] %v849_v27   ;;  %v516_v31 = vadd.f32 %v515_v30, %v487_v28 }
  0xed   : > { %v541_v33 = vadd.f32 %v840_v29, %v516_v31 }
  0xef   : > { %v859_v34 = vpack.c.bf16 %v541_v33, %v540_v32 }
  0xf1   : > { %866 = vst [vmem:[%s1321_s25 + $0x18] sm:$0xff] %v859_v34  }
  0xf2   : > { %1089 = shalt.err (!%p1086_p0)
}
  0xf3   : > { %s1156_s21 = smov 64   ;;  %s1157_s1 = smov 4  }
  0xf4   : > { %893 = dma.vmem_to_hbm [thread:$0]  (%p1266_p7), %s574_s9, 512, %s576_s18, %s559_s10, %s1156_s21, %s1156_s21, %s1157_s1  }
  0xf5 PF: > { %s590_s3 = sand.u32 1, %s1128_s15   ;;  %p907_p3 = pnand %p689_p11, %p1232_p6 }
  0xf6   : > { %s591_s23 = scalar_lea.sflag [#allocation4], %s590_s3 }
  0xf7   : > { %p908_p5 = pneg %p907_p3 }
  0xf9   : > { %1123 = dma.done.wait (%p908_p5), %s591_s23, 512  }
  0xfa   : > { %1125 = vsyncadd (%p908_p5), %s591_s23, 4294966784  ;;  %s21_s20 = sadd.s32 1, %s1148_s20   ;;  %s1382_s15 = smov %s1132_s16 }
  0xfb   : > { %p18_p9 = scmp.ge.s32.totalorder %s21_s20, 4   ;;  %s1383_s16 = smov %s1136_s17 }
  0xfc   : > { %s1384_s17 = smov %s1275_s7  ;;  %s1385_s18 = smov %s1144_s19 }
  0xfd   : > { %s1386_s19 = smov %s1388_s14  ;;  %20 = sbr.rel (!%p18_p9) target bundleno = 10 (0xa), region = 90 }
 0x102   :  { %597 = vsyncpa [#allocation3], 1 }
 0x103   :  { %599 = vsyncpa [#allocation3 + $0x1], 1 }
 0x104   :  { %600 = vsyncpa [#allocation6], 1 }
 0x105   :  { %601 = vsyncpa [#allocation4], 1 }
 0x106   :  { %603 = vsyncpa [#allocation4 + $0x1], 1 }

// kernel: tpu_custom_call.1
= control target key start
LH: loop header
LB: loop body
LE: loop exit
PB: predicated region body
PF: predicated region fallthrough
CT: control target
= control target key end

     0   :  { %s1366_s0 = inlined_call_operand.hbm [shape: bf16[2,64,256], index: 0, kind: input, shape index: {}]   ;;  %s1367_s1 = inlined_call_operand.hbm [shape: bf16[256,128], index: 1, kind: input, shape index: {}]   ;;  %s1368_s2 = inlined_call_operand.vmem [shape: bf16[1,128], index: 2, kind: input, shape index: {}]   ;;  %s1369_s3 = inlined_call_operand.hbm [shape: bf16[64,128], index: 3, kind: input, shape index: {}]   ;;  %s1370_s4 = inlined_call_operand.hbm [shape: bf16[2,64,128], index: 4, kind: output, shape index: {}]  }
   0x1   :  { %1371 = sst [smem:[#allocation12_spill]] %s1367_s1 }
   0x2   :  { %1372 = sst [smem:[#allocation13_spill]] %s1369_s3 }
   0x3   :  { %9 = vsyncpa [#allocation3], 0 }
   0x4   :  { %11 = vsyncpa [#allocation3 + $0x1], 0 }
   0x5   :  { %12 = vsyncpa [#allocation6], 0 }
   0x6   :  { %13 = vsyncpa [#allocation4], 0 }
   0x7   :  { %15 = vsyncpa [#allocation4 + $0x1], 0  ;;  %s1183_s15 = smov 0   ;;  %s1185_s16 = smov 0  }
   0x8   :  { %s1187_s17 = smov 0   ;;  %s1189_s18 = smov 0  }
   0x9   :  { %s1191_s19 = smov 0   ;;  %s1193_s20 = smov 0  }
   0xa LB: > { %s684_s21 = sadd.s32 4294967295, %s1148_s20   ;;  %s685_s22 = sadd.s32 4294967294, %s1148_s20   ;;  %s1148_s20 = sphi %s1193_s20, %s21_s20   ;;  %s1144_s19 = sphi %s1191_s19, %s1386_s19   ;;  %s1140_s18 = sphi %s1189_s18, %s1385_s18   ;;  %s1136_s17 = sphi %s1187_s17, %s1384_s17   ;;  %s1132_s16 = sphi %s1185_s16, %s1383_s16   ;;  %s1128_s15 = sphi %s1183_s15, %s1382_s15  }
   0xb   : > { %p55_p0 = scmp.ne.s32.totalorder %s1132_s16, %s1128_s15  ;;  %p1217_p1 = scmp.eq.s32.totalorder %s684_s21, 0 }
   0xc   : > { %p1221_p2 = scmp.eq.s32.totalorder %s684_s21, 1  ;;  %p155_p3 = scmp.eq.s32.totalorder %s685_s22, 1 }
   0xd   : > { %p1227_p4 = por %p1217_p1, %p55_p0  ;;  %p686_p5 = scmp.ge.s32.totalorder %s1148_s20, 1 }
   0xe   : > { %p1232_p6 = por %p155_p3, %p55_p0  ;;  %p162_p7 = scmp.lt.s32.totalorder %s1148_s20, 3 }
   0xf   : > { %s1377_s1 = sld [smem:[#allocation12_spill]]  ;;  %s1150_s5 = smov [#allocation5]  }
  0x10   : > { %p1240_p8 = pnand %p686_p5, %p162_p7  ;;  %s175_s6 = sshll.u32 %s1150_s5, 4  ;;  %s176_s6 = int_to_ptr.vmem [resolvable:$true] %s175_s6 }
  0x11   : > { %p689_p11 = scmp.ge.s32.totalorder %s1148_s20, 2  ;;  %s1379_s3 = sld [smem:[#allocation13_spill]] }
  0x12   : > { %p895_p9 = pneg %p1240_p8  ;;  %s1151_s10 = smov 64  }
  0x13   : > { %s1152_s11 = smov 4   ;;  %s1153_s12 = smov [#allocation7]  }
  0x14   : > { %p896_p10 = pnand %p895_p9, %p1217_p1  ;;  %s195_s13 = sshll.u32 %s1153_s12, 4  ;;  %s196_s13 = int_to_ptr.vmem [resolvable:$true] %s195_s13 }
  0x15   : > { %s173_s29 = sshll.u32 %s1377_s1, 4  ;;  %s33_s14 = sadd.s32 1, %s1144_s19  ;;  %s174_s29 = int_to_ptr.hbm [resolvable:$true] %s173_s29 }
  0x16   : > { %898 = dma.hbm_to_vmem [thread:$0]  (!%p896_p10), %s174_s29, 2048, %s176_s6, [#allocation6], %s1151_s10, %s1151_s10, %s1152_s11  }
  0x17   : > { %s193_s9 = sshll.u32 %s1379_s3, 4  ;;  %s42_s21 = sadd.s32 1, %s1136_s17  ;;  %s194_s9 = int_to_ptr.hbm [resolvable:$true] %s193_s9 }
  0x18   : > { %901 = dma.hbm_to_vmem [thread:$0]  (!%p896_p10), %s194_s9, 512, %s196_s13, [#allocation6], %s1151_s10, %s1151_s10, %s1152_s11  }
  0x19   : > { %p35_p12 = scmp.ge.s32.totalorder %s33_s14, 2  ;;  %p49_p13 = scmp.ne.s32.totalorder %s1136_s17, %s1132_s16 }
  0x1a   : > { %p50_p0 = scmp.eq.s32.totalorder %s1148_s20, 0  ;;  %p912_p3 = scmp.lt.s32.totalorder %s1148_s20, 2 }
  0x1b   : > { %s1388_s14 = smov (%p35_p12, %s33_s14), 0  ;;  %p1266_p7 = por %p1221_p2, %p49_p13 }
  0x1c   : > { %p1260_p5 = por %p50_p0, %p49_p13  ;;  %s37_s28 = ssub.s32 %s1144_s19, %s1388_s14 }
  0x1d   : > { %s209_s29 = sand.u32 1, %s1136_s17   ;;  %p40_p9 = scmp.eq.s32.totalorder %s37_s28, 0 }
  0x1e   : > { %s690_s5 = sshll.u32 %s209_s29, 6  ;;  %s799_s6 = sshll.u32 %s1144_s19, 6 }
  0x1f   : > { %s1275_s7 = scalar_select %p40_p9, %s1136_s17, %s42_s21  }
  0x20   : > { %s221_s10 = scalar_lea.hbm %s1366_s0, %s799_s6  ;;  %s213_s12 = scalar_lea.vmem [#allocation2], %s690_s5 }
  0x21   : > { %s222_s11 = sshll.u32 %s221_s10, 4  ;;  %s224_s13 = sshll.u32 %s213_s12, 4  ;;  %s223_s11 = int_to_ptr.hbm [resolvable:$true] %s222_s11  ;;  %s225_s13 = int_to_ptr.vmem [resolvable:$true] %s224_s13 }
  0x22   : > { %p903_p2 = pnand %p912_p3, %p1260_p5  ;;  %s210_s24 = scalar_lea.sflag [#allocation3], %s209_s29 }
  0x23   : > { %s1154_s1 = smov 128   ;;  %s1155_s3 = smov 8  }
  0x24   : > { %905 = dma.hbm_to_vmem [thread:$0]  (!%p903_p2), %s223_s11, 1024, %s225_s13, %s210_s24, %s1154_s1, %s1154_s1, %s1155_s3  }
  0x25   : > { %236 = sbr.rel (%p1240_p8) target bundleno = 245 (0xf5), region = 36  ;;  %s1287_s21 = sand.u32 (!%p1240_p8), 1, %s1132_s16  }
  0x26   : > { %s694_s28 = sshll.u32 (!%p1240_p8), %s1287_s21, 6  ;;  %s239_s5 = scalar_lea.sflag (!%p1240_p8), [#allocation3], %s1287_s21 }
  0x27   : > { %s1291_s6 = scalar_lea.vmem (!%p1240_p8), [#allocation2], %s694_s28 }
  0x2a   : > { %1115 = dma.done.wait (%p1227_p4), %s239_s5, 1024  }
  0x2b   : > { %1117 = vsyncadd (%p1227_p4), %s239_s5, 4294966272 }
  0x2c   : > { %1119 = dma.done.wait (%p1217_p1), [#allocation6], 2560  }
  0x2d   : > { %1121 = vsyncadd (%p1217_p1), [#allocation6], 4294964736  ;;  %v815_v0 = vld [vmem:[#allocation5 + $0x38] sm:$0xff]  ;;  %v814_v2 = vld [vmem:[#allocation5 + $0x30] sm:$0xff]  ;;  %s697_s23 = sshll.u32 %s1287_s21, 5  ;;  %s824_s30 = sshll.u32 %s1140_s18, 5 }
  0x2e   : > { %v823_v1 = vld [vmem:[#allocation5 + $0x78] sm:$0xff]  ;;  %460 = vmatpush.bf16.msra.mxu0 %v815_v0  ;;  %867 = vmatpush.bf16.msra.mxu2 %v815_v0  ;;  %v822_v3 = vld [vmem:[#allocation5 + $0x70] sm:$0xff]  ;;  %v813_v4 = vld [vmem:[#allocation5 + $0x28] sm:$0xff]  ;;  %s1321_s25 = scalar_lea.vmem [#allocation8], %s697_s23  ;;  %s572_s8 = scalar_lea.hbm %s1370_s4, %s824_s30 }
  0x2f   : > { %489 = vmatpush.bf16.msra.mxu1 %v823_v1  ;;  %875 = vmatpush.bf16.msra.mxu3 %v823_v1  ;;  %v821_v5 = vld [vmem:[#allocation5 + $0x68] sm:$0xff]  ;;  %v812_v6 = vld [vmem:[#allocation5 + $0x20] sm:$0xff]  ;;  %v811_v8 = vld [vmem:[#allocation5 + $0x18] sm:$0xff]  ;;  %s573_s9 = sshll.u32 %s1321_s25, 4  ;;  %s575_s18 = sshll.u32 %s572_s8, 4  ;;  %s574_s9 = int_to_ptr.vmem [resolvable:$true] %s573_s9  ;;  %s576_s18 = int_to_ptr.hbm [resolvable:$true] %s575_s18 }
  0x30   : > { %v820_v7 = vld [vmem:[#allocation5 + $0x60] sm:$0xff]  ;;  %v819_v9 = vld [vmem:[#allocation5 + $0x58] sm:$0xff]  ;;  %v810_v10 = vld [vmem:[#allocation5 + $0x10] sm:$0xff]  ;;  %s559_s10 = scalar_lea.sflag [#allocation4], %s1287_s21  ;;  %s1076_s11 = sshra.s32 %s576_s18, 4  ;;  %s1077_s11 = int_to_ptr.hbm [resolvable:$true] %s1076_s11 }
  0x31   : > { %v818_v11 = vld [vmem:[#allocation5 + $0x50] sm:$0xff]  ;;  %v809_v12 = vld [vmem:[#allocation5 + $0x8] sm:$0xff]  ;;  %v808_v14 = vld [vmem:[#allocation5] sm:$0xff]  ;;  %s1078_s12 = scalar_lea.hbm %s1077_s11, 32  ;;  %s1082_s28 = scalar_lea.hbm %s1370_s4, 64 }
  0x32   : > { %461 = vmatpush.bf16.msra.mxu0 %v814_v2  ;;  %868 = vmatpush.bf16.msra.mxu2 %v814_v2  ;;  %v817_v13 = vld [vmem:[#allocation5 + $0x48] sm:$0xff]  ;;  %v816_v15 = vld [vmem:[#allocation5 + $0x40] sm:$0xff]  ;;  %v708_v28 = vld [vmem:[%s1291_s6 + $0x10] sm:$0xf]  ;;  %p1079_p1 = scmp.ne.s32.totalorder %s1077_s11, %s1078_s12  ;;  %p1083_p10 = scmp.lt.s32.totalorder %s1077_s11, %s1370_s4 }
  0x33   : > { %490 = vmatpush.bf16.msra.mxu1 %v822_v3  ;;  %876 = vmatpush.bf16.msra.mxu3 %v822_v3  ;;  %v700_v16 = vld [vmem:[%s1291_s6] sm:$0xf]  ;;  %v801_v17 = vld [vmem:[%s1291_s6 + $0x4] sm:$0xf0]  ;;  %v800_v20 = vld [vmem:[%s1291_s6 + $0x4] sm:$0xf]  ;;  %p1084_p12 = scmp.lt.s32.totalorder %s1082_s28, %s1078_s12 }
  0x34   : > { %v716_v18 = vld [vmem:[%s1291_s6 + $0x20] sm:$0xf]  ;;  %v805_v19 = vld [vmem:[%s1291_s6 + $0x24] sm:$0xf0]  ;;  %v702_v21 = vld [vmem:[%s1291_s6 + $0x8] sm:$0xf0]  ;;  %v701_v24 = vor.u32 %v801_v17, %v700_v16  ;;  %p1080_p4 = pnand %p1079_p1, %p1266_p7 }
  0x35   : > { %v804_v22 = vld [vmem:[%s1291_s6 + $0x24] sm:$0xf]  ;;  %v718_v23 = vld [vmem:[%s1291_s6 + $0x28] sm:$0xf0]  ;;  %v717_v25 = vor.u32 %v805_v19, %v716_v18  ;;  %v705_v26 = vor.u32 %v800_v20, %v702_v21  ;;  %v803_v29 = vld [vmem:[%s1291_s6 + $0x14] sm:$0xf0]  ;;  %p1085_p13 = por %p1084_p12, %p1083_p10 }
  0x36   : > { %462 = vmatpush.bf16.msra.mxu0 %v813_v4  ;;  %869 = vmatpush.bf16.msra.mxu2 %v813_v4  ;;  %v721_v27 = vor.u32 %v804_v22, %v718_v23  ;;  %v724_v30 = vld [vmem:[%s1291_s6 + $0x30] sm:$0xf]  ;;  %v807_v31 = vld [vmem:[%s1291_s6 + $0x34] sm:$0xf0]  ;;  %v802_v32 = vld [vmem:[%s1291_s6 + $0x14] sm:$0xf]  ;;  %v709_v36 = vor.u32 %v803_v29, %v708_v28  ;;  %p1081_p8 = pneg %p1080_p4 }
  0x37   : > { %491 = vmatpush.bf16.msra.mxu1 %v821_v5  ;;  %877 = vmatpush.bf16.msra.mxu3 %v821_v5  ;;  %v710_v33 = vld [vmem:[%s1291_s6 + $0x18] sm:$0xf0]  ;;  %v806_v34 = vld [vmem:[%s1291_s6 + $0x34] sm:$0xf]  ;;  %v725_v37 = vor.u32 %v807_v31, %v724_v30  ;;  %v321_v40 = vld [vmem:[%s1368_s2] sm:$0x1] }
  0x38   : > { %v726_v35 = vld [vmem:[%s1291_s6 + $0x38] sm:$0xf0]  ;;  %v713_v38 = vor.u32 %v802_v32, %v710_v33  ;;  %v322_v41 = vunpack.c.l.bf16 %v321_v40  ;;  %v826_v46 = vld [vmem:[#allocation7] sm:$0xff]   ;;  %v862_v56 = vld [vmem:[#allocation7 + $0x10] sm:$0xff]   ;;  %p1086_p0 = pnand %p1085_p13, %p1081_p8 }
  0x39   : > { %v729_v39 = vor.u32 %v806_v34, %v726_v35  ;;  %v827_v51 = vunpack.c.l.bf16 %v826_v46  ;;  %v828_v54 = vunpack.c.h.bf16 %v826_v46  ;;  %v835_v60 = vunpack.c.l.bf16 %v862_v56  ;;  %v863_v20 = vld [vmem:[#allocation7 + $0x18] sm:$0xff]  }
  0x3a   : > { %463 = vmatpush.bf16.msra.mxu0 %v812_v6  ;;  %870 = vmatpush.bf16.msra.mxu2 %v812_v6  ;;  %v323_v43 = vperm.slane %v322_v41, 0  ;;  %v836_v2 = vunpack.c.h.bf16 %v862_v56  ;;  %v840_v29 = vunpack.c.h.bf16 %v863_v20 }
  0x3b   : > { %492 = vmatpush.bf16.msra.mxu1 %v820_v7  ;;  %878 = vmatpush.bf16.msra.mxu3 %v820_v7 }
  0x3e   : > { %464 = vmatpush.bf16.msra.mxu0 %v811_v8  ;;  %871 = vmatpush.bf16.msra.mxu2 %v811_v8 }
  0x3f   : > { %493 = vmatpush.bf16.msra.mxu1 %v819_v9  ;;  %879 = vmatpush.bf16.msra.mxu3 %v819_v9 }
  0x42   : > { %465 = vmatpush.bf16.msra.mxu0 %v810_v10  ;;  %872 = vmatpush.bf16.msra.mxu2 %v810_v10  ;;  %v861_v10 = vld [vmem:[#allocation7 + $0x8] sm:$0xff]  }
  0x43   : > { %494 = vmatpush.bf16.msra.mxu1 %v818_v11  ;;  %880 = vmatpush.bf16.msra.mxu3 %v818_v11  ;;  %v832_v17 = vunpack.c.h.bf16 %v861_v10 }
  0x46   : > { %466 = vmatpush.bf16.msra.mxu0 %v809_v12  ;;  %873 = vmatpush.bf16.msra.mxu2 %v809_v12 }
  0x47   : > { %495 = vmatpush.bf16.msra.mxu1 %v817_v13  ;;  %881 = vmatpush.bf16.msra.mxu3 %v817_v13 }
  0x4a   : > { %467 = vmatpush.bf16.msra.mxu0 %v808_v14  ;;  %874 = vmatpush.bf16.msra.mxu2 %v808_v14 }
  0x4b   : > { %496 = vmatpush.bf16.msra.mxu1 %v816_v15  ;;  %882 = vmatpush.bf16.msra.mxu3 %v816_v15  ;;  %v831_v15 = vunpack.c.l.bf16 %v861_v10 }
  0x4d   : > { %468 = vmatmul.bf16.vlgmr.msra.gmra.mxu0 %v701_v24  ;;  %478 = vmatmul.bf16.vlgmr.msra.gmra.mxu2 %v717_v25  ;;  %v839_v24 = vunpack.c.l.bf16 %v863_v20 }
  0x4e   : > { %497 = vmatmul.bf16.vlgmr.msra.gmra.mxu1 %v705_v26  ;;  %507 = vmatmul.bf16.vlgmr.msra.gmra.mxu3 %v721_v27 }
  0x5d   : > { %473 = vmatmul.bf16.gmra.mxu0 %v709_v36  ;;  %483 = vmatmul.bf16.gmra.mxu2 %v725_v37 }
  0x5e   : > { %502 = vmatmul.bf16.gmra.mxu1 %v713_v38  ;;  %512 = vmatmul.bf16.gmra.mxu3 %v729_v39 }
  0xca   : > { %v469_v42 = vpop.f32.mrf.mxu0 }
  0xcb   : > { %v498_v44 = vpop.f32.mrf.mxu1  ;;  %v470_v45 = vadd.f32 %v469_v42, %v323_v43 }
  0xcd   : > { %v499_v50 = vadd.f32 %v498_v44, %v470_v45 }
  0xcf   : > { %v534_v58 = vadd.f32 %v827_v51, %v499_v50 }
  0xd0   : > { %v479_v47 = vpop.f32.mrf.mxu2 }
  0xd1   : > { %v508_v48 = vpop.f32.mrf.mxu3  ;;  %v480_v55 = vadd.f32 %v479_v47, %v323_v43 }
  0xd2   : > { %v471_v49 = vpop.f32.mrf.mxu0 }
  0xd3   : > { %v472_v52 = vadd.f32 %v471_v49, %v323_v43  ;;  %v500_v53 = vpop.f32.mrf.mxu1  ;;  %v509_v62 = vadd.f32 %v508_v48, %v480_v55 }
  0xd5   : > { %v501_v57 = vadd.f32 %v500_v53, %v472_v52  ;;  %v538_v6 = vadd.f32 %v835_v60, %v509_v62 }
  0xd7   : > { %v535_v59 = vadd.f32 %v828_v54, %v501_v57 }
  0xd8   : > { %v481_v61 = vpop.f32.mrf.mxu2 }
  0xd9   : > { %v844_v63 = vpack.c.bf16 %v535_v59, %v534_v58  ;;  %v482_v0 = vadd.f32 %v481_v61, %v323_v43  ;;  %v510_v1 = vpop.f32.mrf.mxu3 }
  0xda   : > { %v474_v3 = vpop.f32.mrf.mxu0 }
  0xdb   : > { %845 = vst [vmem:[%s1321_s25] sm:$0xff] %v844_v63   ;;  %v511_v4 = vadd.f32 %v510_v1, %v482_v0  ;;  %v503_v5 = vpop.f32.mrf.mxu1  ;;  %v475_v9 = vadd.f32 %v474_v3, %v323_v43 }
  0xdd   : > { %v539_v7 = vadd.f32 %v836_v2, %v511_v4  ;;  %v504_v14 = vadd.f32 %v503_v5, %v475_v9 }
  0xdf   : > { %v854_v8 = vpack.c.bf16 %v539_v7, %v538_v6  ;;  %v536_v22 = vadd.f32 %v831_v15, %v504_v14 }
  0xe0   : > { %v484_v11 = vpop.f32.mrf.mxu2 }
  0xe1   : > { %865 = vst [vmem:[%s1321_s25 + $0x10] sm:$0xff] %v854_v8   ;;  %v513_v12 = vpop.f32.mrf.mxu3  ;;  %v485_v19 = vadd.f32 %v484_v11, %v323_v43 }
  0xe2   : > { %v476_v13 = vpop.f32.mrf.mxu0 }
  0xe3   : > { %v477_v16 = vadd.f32 %v476_v13, %v323_v43  ;;  %v505_v18 = vpop.f32.mrf.mxu1  ;;  %v514_v26 = vadd.f32 %v513_v12, %v485_v19 }
  0xe5   : > { %v506_v21 = vadd.f32 %v505_v18, %v477_v16  ;;  %v540_v32 = vadd.f32 %v839_v24, %v514_v26 }
  0xe7   : > { %v537_v23 = vadd.f32 %v832_v17, %v506_v21 }
  0xe8   : > { %v486_v25 = vpop.f32.mrf.mxu2 }
  0xe9   : > { %v849_v27 = vpack.c.bf16 %v537_v23, %v536_v22  ;;  %v487_v28 = vadd.f32 %v486_v25, %v323_v43  ;;  %v515_v30 = vpop.f32.mrf.mxu3 }
  0xeb   : > { %864 = vst [vmem:[%s1321_s25 + $0x8] sm:$0xff] %v849_v27   ;;  %v516_v31 = vadd.f32 %v515_v30, %v487_v28 }
  0xed   : > { %v541_v33 = vadd.f32 %v840_v29, %v516_v31 }
  0xef   : > { %v859_v34 = vpack.c.bf16 %v541_v33, %v540_v32 }
  0xf1   : > { %866 = vst [vmem:[%s1321_s25 + $0x18] sm:$0xff] %v859_v34  }
  0xf2   : > { %1089 = shalt.err (!%p1086_p0)
}
  0xf3   : > { %s1156_s21 = smov 64   ;;  %s1157_s1 = smov 4  }
  0xf4   : > { %893 = dma.vmem_to_hbm [thread:$0]  (%p1266_p7), %s574_s9, 512, %s576_s18, %s559_s10, %s1156_s21, %s1156_s21, %s1157_s1  }
  0xf5 PF: > { %s590_s3 = sand.u32 1, %s1128_s15   ;;  %p907_p3 = pnand %p689_p11, %p1232_p6 }
  0xf6   : > { %s591_s23 = scalar_lea.sflag [#allocation4], %s590_s3 }
  0xf7   : > { %p908_p5 = pneg %p907_p3 }
  0xf9   : > { %1123 = dma.done.wait (%p908_p5), %s591_s23, 512  }
  0xfa   : > { %1125 = vsyncadd (%p908_p5), %s591_s23, 4294966784  ;;  %s21_s20 = sadd.s32 1, %s1148_s20   ;;  %s1382_s15 = smov %s1132_s16 }
  0xfb   : > { %p18_p9 = scmp.ge.s32.totalorder %s21_s20, 4   ;;  %s1383_s16 = smov %s1136_s17 }
  0xfc   : > { %s1384_s17 = smov %s1275_s7  ;;  %s1385_s18 = smov %s1144_s19 }
  0xfd   : > { %s1386_s19 = smov %s1388_s14  ;;  %20 = sbr.rel (!%p18_p9) target bundleno = 10 (0xa), region = 90 }
 0x102   :  { %597 = vsyncpa [#allocation3], 1 }
 0x103   :  { %599 = vsyncpa [#allocation3 + $0x1], 1 }
 0x104   :  { %600 = vsyncpa [#allocation6], 1 }
 0x105   :  { %601 = vsyncpa [#allocation4], 1 }
 0x106   :  { %603 = vsyncpa [#allocation4 + $0x1], 1 }

// kernel: tpu_custom_call.1
= control target key start
LH: loop header
LB: loop body
LE: loop exit
PB: predicated region body
PF: predicated region fallthrough
CT: control target
= control target key end

     0   :  { %s1366_s0 = inlined_call_operand.hbm [shape: bf16[2,64,256], index: 0, kind: input, shape index: {}]   ;;  %s1367_s1 = inlined_call_operand.hbm [shape: bf16[256,128], index: 1, kind: input, shape index: {}]   ;;  %s1368_s2 = inlined_call_operand.vmem [shape: bf16[1,128], index: 2, kind: input, shape index: {}]   ;;  %s1369_s3 = inlined_call_operand.hbm [shape: bf16[64,128], index: 3, kind: input, shape index: {}]   ;;  %s1370_s4 = inlined_call_operand.hbm [shape: bf16[2,64,128], index: 4, kind: output, shape index: {}]  }
   0x1   :  { %1371 = sst [smem:[#allocation12_spill]] %s1367_s1 }
   0x2   :  { %1372 = sst [smem:[#allocation13_spill]] %s1369_s3 }
   0x3   :  { %9 = vsyncpa [#allocation3], 0 }
   0x4   :  { %11 = vsyncpa [#allocation3 + $0x1], 0 }
   0x5   :  { %12 = vsyncpa [#allocation6], 0 }
   0x6   :  { %13 = vsyncpa [#allocation4], 0 }
   0x7   :  { %15 = vsyncpa [#allocation4 + $0x1], 0  ;;  %s1183_s15 = smov 0   ;;  %s1185_s16 = smov 0  }
   0x8   :  { %s1187_s17 = smov 0   ;;  %s1189_s18 = smov 0  }
   0x9   :  { %s1191_s19 = smov 0   ;;  %s1193_s20 = smov 0  }
   0xa LB: > { %s684_s21 = sadd.s32 4294967295, %s1148_s20   ;;  %s685_s22 = sadd.s32 4294967294, %s1148_s20   ;;  %s1148_s20 = sphi %s1193_s20, %s21_s20   ;;  %s1144_s19 = sphi %s1191_s19, %s1386_s19   ;;  %s1140_s18 = sphi %s1189_s18, %s1385_s18   ;;  %s1136_s17 = sphi %s1187_s17, %s1384_s17   ;;  %s1132_s16 = sphi %s1185_s16, %s1383_s16   ;;  %s1128_s15 = sphi %s1183_s15, %s1382_s15  }
   0xb   : > { %p55_p0 = scmp.ne.s32.totalorder %s1132_s16, %s1128_s15  ;;  %p1217_p1 = scmp.eq.s32.totalorder %s684_s21, 0 }
   0xc   : > { %p1221_p2 = scmp.eq.s32.totalorder %s684_s21, 1  ;;  %p155_p3 = scmp.eq.s32.totalorder %s685_s22, 1 }
   0xd   : > { %p1227_p4 = por %p1217_p1, %p55_p0  ;;  %p686_p5 = scmp.ge.s32.totalorder %s1148_s20, 1 }
   0xe   : > { %p1232_p6 = por %p155_p3, %p55_p0  ;;  %p162_p7 = scmp.lt.s32.totalorder %s1148_s20, 3 }
   0xf   : > { %s1377_s1 = sld [smem:[#allocation12_spill]]  ;;  %s1150_s5 = smov [#allocation5]  }
  0x10   : > { %p1240_p8 = pnand %p686_p5, %p162_p7  ;;  %s175_s6 = sshll.u32 %s1150_s5, 4  ;;  %s176_s6 = int_to_ptr.vmem [resolvable:$true] %s175_s6 }
  0x11   : > { %p689_p11 = scmp.ge.s32.totalorder %s1148_s20, 2  ;;  %s1379_s3 = sld [smem:[#allocation13_spill]] }
  0x12   : > { %p895_p9 = pneg %p1240_p8  ;;  %s1151_s10 = smov 64  }
  0x13   : > { %s1152_s11 = smov 4   ;;  %s1153_s12 = smov [#allocation7]  }
  0x14   : > { %p896_p10 = pnand %p895_p9, %p1217_p1  ;;  %s195_s13 = sshll.u32 %s1153_s12, 4  ;;  %s196_s13 = int_to_ptr.vmem [resolvable:$true] %s195_s13 }
  0x15   : > { %s173_s29 = sshll.u32 %s1377_s1, 4  ;;  %s33_s14 = sadd.s32 1, %s1144_s19  ;;  %s174_s29 = int_to_ptr.hbm [resolvable:$true] %s173_s29 }
  0x16   : > { %898 = dma.hbm_to_vmem [thread:$0]  (!%p896_p10), %s174_s29, 2048, %s176_s6, [#allocation6], %s1151_s10, %s1151_s10, %s1152_s11  }
  0x17   : > { %s193_s9 = sshll.u32 %s1379_s3, 4  ;;  %s42_s21 = sadd.s32 1, %s1136_s17  ;;  %s194_s9 = int_to_ptr.hbm [resolvable:$true] %s193_s9 }
  0x18   : > { %901 = dma.hbm_to_vmem [thread:$0]  (!%p896_p10), %s194_s9, 512, %s196_s13, [#allocation6], %s1151_s10, %s1151_s10, %s1152_s11  }
  0x19   : > { %p35_p12 = scmp.ge.s32.totalorder %s33_s14, 2  ;;  %p49_p13 = scmp.ne.s32.totalorder %s1136_s17, %s1132_s16 }
  0x1a   : > { %p50_p0 = scmp.eq.s32.totalorder %s1148_s20, 0  ;;  %p912_p3 = scmp.lt.s32.totalorder %s1148_s20, 2 }
  0x1b   : > { %s1388_s14 = smov (%p35_p12, %s33_s14), 0  ;;  %p1266_p7 = por %p1221_p2, %p49_p13 }
  0x1c   : > { %p1260_p5 = por %p50_p0, %p49_p13  ;;  %s37_s28 = ssub.s32 %s1144_s19, %s1388_s14 }
  0x1d   : > { %s209_s29 = sand.u32 1, %s1136_s17   ;;  %p40_p9 = scmp.eq.s32.totalorder %s37_s28, 0 }
  0x1e   : > { %s690_s5 = sshll.u32 %s209_s29, 6  ;;  %s799_s6 = sshll.u32 %s1144_s19, 6 }
  0x1f   : > { %s1275_s7 = scalar_select %p40_p9, %s1136_s17, %s42_s21  }
  0x20   : > { %s221_s10 = scalar_lea.hbm %s1366_s0, %s799_s6  ;;  %s213_s12 = scalar_lea.vmem [#allocation2], %s690_s5 }
  0x21   : > { %s222_s11 = sshll.u32 %s221_s10, 4  ;;  %s224_s13 = sshll.u32 %s213_s12, 4  ;;  %s223_s11 = int_to_ptr.hbm [resolvable:$true] %s222_s11  ;;  %s225_s13 = int_to_ptr.vmem [resolvable:$true] %s224_s13 }
  0x22   : > { %p903_p2 = pnand %p912_p3, %p1260_p5  ;;  %s210_s24 = scalar_lea.sflag [#allocation3], %s209_s29 }
  0x23   : > { %s1154_s1 = smov 128   ;;  %s1155_s3 = smov 8  }
  0x24   : > { %905 = dma.hbm_to_vmem [thread:$0]  (!%p903_p2), %s223_s11, 1024, %s225_s13, %s210_s24, %s1154_s1, %s1154_s1, %s1155_s3  }
  0x25   : > { %236 = sbr.rel (%p1240_p8) target bundleno = 245 (0xf5), region = 36  ;;  %s1287_s21 = sand.u32 (!%p1240_p8), 1, %s1132_s16  }
  0x26   : > { %s694_s28 = sshll.u32 (!%p1240_p8), %s1287_s21, 6  ;;  %s239_s5 = scalar_lea.sflag (!%p1240_p8), [#allocation3], %s1287_s21 }
  0x27   : > { %s1291_s6 = scalar_lea.vmem (!%p1240_p8), [#allocation2], %s694_s28 }
  0x2a   : > { %1115 = dma.done.wait (%p1227_p4), %s239_s5, 1024  }
  0x2b   : > { %1117 = vsyncadd (%p1227_p4), %s239_s5, 4294966272 }
  0x2c   : > { %1119 = dma.done.wait (%p1217_p1), [#allocation6], 2560  }
  0x2d   : > { %1121 = vsyncadd (%p1217_p1), [#allocation6], 4294964736  ;;  %v815_v0 = vld [vmem:[#allocation5 + $0x38] sm:$0xff]  ;;  %v814_v2 = vld [vmem:[#allocation5 + $0x30] sm:$0xff]  ;;  %s697_s23 = sshll.u32 %s1287_s21, 5  ;;  %s824_s30 = sshll.u32 %s1140_s18, 5 }
  0x2e   : > { %v823_v1 = vld [vmem:[#allocation5 + $0x78] sm:$0xff]  ;;  %460 = vmatpush.bf16.msra.mxu0 %v815_v0  ;;  %867 = vmatpush.bf16.msra.mxu2 %v815_v0  ;;  %v822_v3 = vld [vmem:[#allocation5 + $0x70] sm:$0xff]  ;;  %v813_v4 = vld [vmem:[#allocation5 + $0x28] sm:$0xff]  ;;  %s1321_s25 = scalar_lea.vmem [#allocation8], %s697_s23  ;;  %s572_s8 = scalar_lea.hbm %s1370_s4, %s824_s30 }
  0x2f   : > { %489 = vmatpush.bf16.msra.mxu1 %v823_v1  ;;  %875 = vmatpush.bf16.msra.mxu3 %v823_v1  ;;  %v821_v5 = vld [vmem:[#allocation5 + $0x68] sm:$0xff]  ;;  %v812_v6 = vld [vmem:[#allocation5 + $0x20] sm:$0xff]  ;;  %v811_v8 = vld [vmem:[#allocation5 + $0x18] sm:$0xff]  ;;  %s573_s9 = sshll.u32 %s1321_s25, 4  ;;  %s575_s18 = sshll.u32 %s572_s8, 4  ;;  %s574_s9 = int_to_ptr.vmem [resolvable:$true] %s573_s9  ;;  %s576_s18 = int_to_ptr.hbm [resolvable:$true] %s575_s18 }
  0x30   : > { %v820_v7 = vld [vmem:[#allocation5 + $0x60] sm:$0xff]  ;;  %v819_v9 = vld [vmem:[#allocation5 + $0x58] sm:$0xff]  ;;  %v810_v10 = vld [vmem:[#allocation5 + $0x10] sm:$0xff]  ;;  %s559_s10 = scalar_lea.sflag [#allocation4], %s1287_s21  ;;  %s1076_s11 = sshra.s32 %s576_s18, 4  ;;  %s1077_s11 = int_to_ptr.hbm [resolvable:$true] %s1076_s11 }
  0x31   : > { %v818_v11 = vld [vmem:[#allocation5 + $0x50] sm:$0xff]  ;;  %v809_v12 = vld [vmem:[#allocation5 + $0x8] sm:$0xff]  ;;  %v808_v14 = vld [vmem:[#allocation5] sm:$0xff]  ;;  %s1078_s12 = scalar_lea.hbm %s1077_s11, 32  ;;  %s1082_s28 = scalar_lea.hbm %s1370_s4, 64 }
  0x32   : > { %461 = vmatpush.bf16.msra.mxu0 %v814_v2  ;;  %868 = vmatpush.bf16.msra.mxu2 %v814_v2  ;;  %v817_v13 = vld [vmem:[#allocation5 + $0x48] sm:$0xff]  ;;  %v816_v15 = vld [vmem:[#allocation5 + $0x40] sm:$0xff]  ;;  %v708_v28 = vld [vmem:[%s1291_s6 + $0x10] sm:$0xf]  ;;  %p1079_p1 = scmp.ne.s32.totalorder %s1077_s11, %s1078_s12  ;;  %p1083_p10 = scmp.lt.s32.totalorder %s1077_s11, %s1370_s4 }
  0x33   : > { %490 = vmatpush.bf16.msra.mxu1 %v822_v3  ;;  %876 = vmatpush.bf16.msra.mxu3 %v822_v3  ;;  %v700_v16 = vld [vmem:[%s1291_s6] sm:$0xf]  ;;  %v801_v17 = vld [vmem:[%s1291_s6 + $0x4] sm:$0xf0]  ;;  %v800_v20 = vld [vmem:[%s1291_s6 + $0x4] sm:$0xf]  ;;  %p1084_p12 = scmp.lt.s32.totalorder %s1082_s28, %s1078_s12 }
  0x34   : > { %v716_v18 = vld [vmem:[%s1291_s6 + $0x20] sm:$0xf]  ;;  %v805_v19 = vld [vmem:[%s1291_s6 + $0x24] sm:$0xf0]  ;;  %v702_v21 = vld [vmem:[%s1291_s6 + $0x8] sm:$0xf0]  ;;  %v701_v24 = vor.u32 %v801_v17, %v700_v16  ;;  %p1080_p4 = pnand %p1079_p1, %p1266_p7 }
  0x35   : > { %v804_v22 = vld [vmem:[%s1291_s6 + $0x24] sm:$0xf]  ;;  %v718_v23 = vld [vmem:[%s1291_s6 + $0x28] sm:$0xf0]  ;;  %v717_v25 = vor.u32 %v805_v19, %v716_v18  ;;  %v705_v26 = vor.u32 %v800_v20, %v702_v21  ;;  %v803_v29 = vld [vmem:[%s1291_s6 + $0x14] sm:$0xf0]  ;;  %p1085_p13 = por %p1084_p12, %p1083_p10 }
  0x36   : > { %462 = vmatpush.bf16.msra.mxu0 %v813_v4  ;;  %869 = vmatpush.bf16.msra.mxu2 %v813_v4  ;;  %v721_v27 = vor.u32 %v804_v22, %v718_v23  ;;  %v724_v30 = vld [vmem:[%s1291_s6 + $0x30] sm:$0xf]  ;;  %v807_v31 = vld [vmem:[%s1291_s6 + $0x34] sm:$0xf0]  ;;  %v802_v32 = vld [vmem:[%s1291_s6 + $0x14] sm:$0xf]  ;;  %v709_v36 = vor.u32 %v803_v29, %v708_v28  ;;  %p1081_p8 = pneg %p1080_p4 }
  0x37   : > { %491 = vmatpush.bf16.msra.mxu1 %v821_v5  ;;  %877 = vmatpush.bf16.msra.mxu3 %v821_v5  ;;  %v710_v33 = vld [vmem:[%s1291_s6 + $0x18] sm:$0xf0]  ;;  %v806_v34 = vld [vmem:[%s1291_s6 + $0x34] sm:$0xf]  ;;  %v725_v37 = vor.u32 %v807_v31, %v724_v30  ;;  %v321_v40 = vld [vmem:[%s1368_s2] sm:$0x1] }
  0x38   : > { %v726_v35 = vld [vmem:[%s1291_s6 + $0x38] sm:$0xf0]  ;;  %v713_v38 = vor.u32 %v802_v32, %v710_v33  ;;  %v322_v41 = vunpack.c.l.bf16 %v321_v40  ;;  %v826_v46 = vld [vmem:[#allocation7] sm:$0xff]   ;;  %v862_v56 = vld [vmem:[#allocation7 + $0x10] sm:$0xff]   ;;  %p1086_p0 = pnand %p1085_p13, %p1081_p8 }
  0x39   : > { %v729_v39 = vor.u32 %v806_v34, %v726_v35  ;;  %v827_v51 = vunpack.c.l.bf16 %v826_v46  ;;  %v828_v54 = vunpack.c.h.bf16 %v826_v46  ;;  %v835_v60 = vunpack.c.l.bf16 %v862_v56  ;;  %v863_v20 = vld [vmem:[#allocation7 + $0x18] sm:$0xff]  }
  0x3a   : > { %463 = vmatpush.bf16.msra.mxu0 %v812_v6  ;;  %870 = vmatpush.bf16.msra.mxu2 %v812_v6  ;;  %v323_v43 = vperm.slane %v322_v41, 0  ;;  %v836_v2 = vunpack.c.h.bf16 %v862_v56  ;;  %v840_v29 = vunpack.c.h.bf16 %v863_v20 }
  0x3b   : > { %492 = vmatpush.bf16.msra.mxu1 %v820_v7  ;;  %878 = vmatpush.bf16.msra.mxu3 %v820_v7 }
  0x3e   : > { %464 = vmatpush.bf16.msra.mxu0 %v811_v8  ;;  %871 = vmatpush.bf16.msra.mxu2 %v811_v8 }
  0x3f   : > { %493 = vmatpush.bf16.msra.mxu1 %v819_v9  ;;  %879 = vmatpush.bf16.msra.mxu3 %v819_v9 }
  0x42   : > { %465 = vmatpush.bf16.msra.mxu0 %v810_v10  ;;  %872 = vmatpush.bf16.msra.mxu2 %v810_v10  ;;  %v861_v10 = vld [vmem:[#allocation7 + $0x8] sm:$0xff]  }
  0x43   : > { %494 = vmatpush.bf16.msra.mxu1 %v818_v11  ;;  %880 = vmatpush.bf16.msra.mxu3 %v818_v11  ;;  %v832_v17 = vunpack.c.h.bf16 %v861_v10 }
  0x46   : > { %466 = vmatpush.bf16.msra.mxu0 %v809_v12  ;;  %873 = vmatpush.bf16.msra.mxu2 %v809_v12 }
  0x47   : > { %495 = vmatpush.bf16.msra.mxu1 %v817_v13  ;;  %881 = vmatpush.bf16.msra.mxu3 %v817_v13 }
  0x4a   : > { %467 = vmatpush.bf16.msra.mxu0 %v808_v14  ;;  %874 = vmatpush.bf16.msra.mxu2 %v808_v14 }
  0x4b   : > { %496 = vmatpush.bf16.msra.mxu1 %v816_v15  ;;  %882 = vmatpush.bf16.msra.mxu3 %v816_v15  ;;  %v831_v15 = vunpack.c.l.bf16 %v861_v10 }
  0x4d   : > { %468 = vmatmul.bf16.vlgmr.msra.gmra.mxu0 %v701_v24  ;;  %478 = vmatmul.bf16.vlgmr.msra.gmra.mxu2 %v717_v25  ;;  %v839_v24 = vunpack.c.l.bf16 %v863_v20 }
  0x4e   : > { %497 = vmatmul.bf16.vlgmr.msra.gmra.mxu1 %v705_v26  ;;  %507 = vmatmul.bf16.vlgmr.msra.gmra.mxu3 %v721_v27 }
  0x5d   : > { %473 = vmatmul.bf16.gmra.mxu0 %v709_v36  ;;  %483 = vmatmul.bf16.gmra.mxu2 %v725_v37 }
  0x5e   : > { %502 = vmatmul.bf16.gmra.mxu1 %v713_v38  ;;  %512 = vmatmul.bf16.gmra.mxu3 %v729_v39 }
  0xca   : > { %v469_v42 = vpop.f32.mrf.mxu0 }
  0xcb   : > { %v498_v44 = vpop.f32.mrf.mxu1  ;;  %v470_v45 = vadd.f32 %v469_v42, %v323_v43 }
  0xcd   : > { %v499_v50 = vadd.f32 %v498_v44, %v470_v45 }
  0xcf   : > { %v534_v58 = vadd.f32 %v827_v51, %v499_v50 }
  0xd0   : > { %v479_v47 = vpop.f32.mrf.mxu2 }
  0xd1   : > { %v508_v48 = vpop.f32.mrf.mxu3  ;;  %v480_v55 = vadd.f32 %v479_v47, %v323_v43 }
  0xd2   : > { %v471_v49 = vpop.f32.mrf.mxu0 }
  0xd3   : > { %v472_v52 = vadd.f32 %v471_v49, %v323_v43  ;;  %v500_v53 = vpop.f32.mrf.mxu1  ;;  %v509_v62 = vadd.f32 %v508_v48, %v480_v55 }
  0xd5   : > { %v501_v57 = vadd.f32 %v500_v53, %v472_v52  ;;  %v538_v6 = vadd.f32 %v835_v60, %v509_v62 }
  0xd7   : > { %v535_v59 = vadd.f32 %v828_v54, %v501_v57 }
  0xd8   : > { %v481_v61 = vpop.f32.mrf.mxu2 }
  0xd9   : > { %v844_v63 = vpack.c.bf16 %v535_v59, %v534_v58  ;;  %v482_v0 = vadd.f32 %v481_v61, %v323_v43  ;;  %v510_v1 = vpop.f32.mrf.mxu3 }
  0xda   : > { %v474_v3 = vpop.f32.mrf.mxu0 }
  0xdb   : > { %845 = vst [vmem:[%s1321_s25] sm:$0xff] %v844_v63   ;;  %v511_v4 = vadd.f32 %v510_v1, %v482_v0  ;;  %v503_v5 = vpop.f32.mrf.mxu1  ;;  %v475_v9 = vadd.f32 %v474_v3, %v323_v43 }
  0xdd   : > { %v539_v7 = vadd.f32 %v836_v2, %v511_v4  ;;  %v504_v14 = vadd.f32 %v503_v5, %v475_v9 }
  0xdf   : > { %v854_v8 = vpack.c.bf16 %v539_v7, %v538_v6  ;;  %v536_v22 = vadd.f32 %v831_v15, %v504_v14 }
  0xe0   : > { %v484_v11 = vpop.f32.mrf.mxu2 }
  0xe1   : > { %865 = vst [vmem:[%s1321_s25 + $0x10] sm:$0xff] %v854_v8   ;;  %v513_v12 = vpop.f32.mrf.mxu3  ;;  %v485_v19 = vadd.f32 %v484_v11, %v323_v43 }
  0xe2   : > { %v476_v13 = vpop.f32.mrf.mxu0 }
  0xe3   : > { %v477_v16 = vadd.f32 %v476_v13, %v323_v43  ;;  %v505_v18 = vpop.f32.mrf.mxu1  ;;  %v514_v26 = vadd.f32 %v513_v12, %v485_v19 }
  0xe5   : > { %v506_v21 = vadd.f32 %v505_v18, %v477_v16  ;;  %v540_v32 = vadd.f32 %v839_v24, %v514_v26 }
  0xe7   : > { %v537_v23 = vadd.f32 %v832_v17, %v506_v21 }
  0xe8   : > { %v486_v25 = vpop.f32.mrf.mxu2 }
  0xe9   : > { %v849_v27 = vpack.c.bf16 %v537_v23, %v536_v22  ;;  %v487_v28 = vadd.f32 %v486_v25, %v323_v43  ;;  %v515_v30 = vpop.f32.mrf.mxu3 }
  0xeb   : > { %864 = vst [vmem:[%s1321_s25 + $0x8] sm:$0xff] %v849_v27   ;;  %v516_v31 = vadd.f32 %v515_v30, %v487_v28 }
  0xed   : > { %v541_v33 = vadd.f32 %v840_v29, %v516_v31 }
  0xef   : > { %v859_v34 = vpack.c.bf16 %v541_v33, %v540_v32 }
  0xf1   : > { %866 = vst [vmem:[%s1321_s25 + $0x18] sm:$0xff] %v859_v34  }
  0xf2   : > { %1089 = shalt.err (!%p1086_p0)
}
  0xf3   : > { %s1156_s21 = smov 64   ;;  %s1157_s1 = smov 4  }
  0xf4   : > { %893 = dma.vmem_to_hbm [thread:$0]  (%p1266_p7), %s574_s9, 512, %s576_s18, %s559_s10, %s1156_s21, %s1156_s21, %s1157_s1  }
  0xf5 PF: > { %s590_s3 = sand.u32 1, %s1128_s15   ;;  %p907_p3 = pnand %p689_p11, %p1232_p6 }
  0xf6   : > { %s591_s23 = scalar_lea.sflag [#allocation4], %s590_s3 }
  0xf7   : > { %p908_p5 = pneg %p907_p3 }
  0xf9   : > { %1123 = dma.done.wait (%p908_p5), %s591_s23, 512  }
  0xfa   : > { %1125 = vsyncadd (%p908_p5), %s591_s23, 4294966784  ;;  %s21_s20 = sadd.s32 1, %s1148_s20   ;;  %s1382_s15 = smov %s1132_s16 }
  0xfb   : > { %p18_p9 = scmp.ge.s32.totalorder %s21_s20, 4   ;;  %s1383_s16 = smov %s1136_s17 }
  0xfc   : > { %s1384_s17 = smov %s1275_s7  ;;  %s1385_s18 = smov %s1144_s19 }
  0xfd   : > { %s1386_s19 = smov %s1388_s14  ;;  %20 = sbr.rel (!%p18_p9) target bundleno = 10 (0xa), region = 90 }
 0x102   :  { %597 = vsyncpa [#allocation3], 1 }
 0x103   :  { %599 = vsyncpa [#allocation3 + $0x1], 1 }
 0x104   :  { %600 = vsyncpa [#allocation6], 1 }
 0x105   :  { %601 = vsyncpa [#allocation4], 1 }
 0x106   :  { %603 = vsyncpa [#allocation4 + $0x1], 1 }

// kernel: tpu_custom_call.1
= control target key start
LH: loop header
LB: loop body
LE: loop exit
PB: predicated region body
PF: predicated region fallthrough
CT: control target
= control target key end

     0   :  { %s1366_s0 = inlined_call_operand.hbm [shape: bf16[2,64,256], index: 0, kind: input, shape index: {}]   ;;  %s1367_s1 = inlined_call_operand.hbm [shape: bf16[256,128], index: 1, kind: input, shape index: {}]   ;;  %s1368_s2 = inlined_call_operand.vmem [shape: bf16[1,128], index: 2, kind: input, shape index: {}]   ;;  %s1369_s3 = inlined_call_operand.hbm [shape: bf16[64,128], index: 3, kind: input, shape index: {}]   ;;  %s1370_s4 = inlined_call_operand.hbm [shape: bf16[2,64,128], index: 4, kind: output, shape index: {}]  }
   0x1   :  { %1371 = sst [smem:[#allocation12_spill]] %s1367_s1 }
   0x2   :  { %1372 = sst [smem:[#allocation13_spill]] %s1369_s3 }
   0x3   :  { %9 = vsyncpa [#allocation3], 0 }
   0x4   :  { %11 = vsyncpa [#allocation3 + $0x1], 0 }
   0x5   :  { %12 = vsyncpa [#allocation6], 0 }
   0x6   :  { %13 = vsyncpa [#allocation4], 0 }
   0x7   :  { %15 = vsyncpa [#allocation4 + $0x1], 0  ;;  %s1183_s15 = smov 0   ;;  %s1185_s16 = smov 0  }
   0x8   :  { %s1187_s17 = smov 0   ;;  %s1189_s18 = smov 0  }
   0x9   :  { %s1191_s19 = smov 0   ;;  %s1193_s20 = smov 0  }
   0xa LB: > { %s684_s21 = sadd.s32 4294967295, %s1148_s20   ;;  %s685_s22 = sadd.s32 4294967294, %s1148_s20   ;;  %s1148_s20 = sphi %s1193_s20, %s21_s20   ;;  %s1144_s19 = sphi %s1191_s19, %s1386_s19   ;;  %s1140_s18 = sphi %s1189_s18, %s1385_s18   ;;  %s1136_s17 = sphi %s1187_s17, %s1384_s17   ;;  %s1132_s16 = sphi %s1185_s16, %s1383_s16   ;;  %s1128_s15 = sphi %s1183_s15, %s1382_s15  }
   0xb   : > { %p55_p0 = scmp.ne.s32.totalorder %s1132_s16, %s1128_s15  ;;  %p1217_p1 = scmp.eq.s32.totalorder %s684_s21, 0 }
   0xc   : > { %p1221_p2 = scmp.eq.s32.totalorder %s684_s21, 1  ;;  %p155_p3 = scmp.eq.s32.totalorder %s685_s22, 1 }
   0xd   : > { %p1227_p4 = por %p1217_p1, %p55_p0  ;;  %p686_p5 = scmp.ge.s32.totalorder %s1148_s20, 1 }
   0xe   : > { %p1232_p6 = por %p155_p3, %p55_p0  ;;  %p162_p7 = scmp.lt.s32.totalorder %s1148_s20, 3 }
   0xf   : > { %s1377_s1 = sld [smem:[#allocation12_spill]]  ;;  %s1150_s5 = smov [#allocation5]  }
  0x10   : > { %p1240_p8 = pnand %p686_p5, %p162_p7  ;;  %s175_s6 = sshll.u32 %s1150_s5, 4  ;;  %s176_s6 = int_to_ptr.vmem [resolvable:$true] %s175_s6 }
  0x11   : > { %p689_p11 = scmp.ge.s32.totalorder %s1148_s20, 2  ;;  %s1379_s3 = sld [smem:[#allocation13_spill]] }
  0x12   : > { %p895_p9 = pneg %p1240_p8  ;;  %s1151_s10 = smov 64  }
  0x13   : > { %s1152_s11 = smov 4   ;;  %s1153_s12 = smov [#allocation7]  }
  0x14   : > { %p896_p10 = pnand %p895_p9, %p1217_p1  ;;  %s195_s13 = sshll.u32 %s1153_s12, 4  ;;  %s196_s13 = int_to_ptr.vmem [resolvable:$true] %s195_s13 }
  0x15   : > { %s173_s29 = sshll.u32 %s1377_s1, 4  ;;  %s33_s14 = sadd.s32 1, %s1144_s19  ;;  %s174_s29 = int_to_ptr.hbm [resolvable:$true] %s173_s29 }
  0x16   : > { %898 = dma.hbm_to_vmem [thread:$0]  (!%p896_p10), %s174_s29, 2048, %s176_s6, [#allocation6], %s1151_s10, %s1151_s10, %s1152_s11  }
  0x17   : > { %s193_s9 = sshll.u32 %s1379_s3, 4  ;;  %s42_s21 = sadd.s32 1, %s1136_s17  ;;  %s194_s9 = int_to_ptr.hbm [resolvable:$true] %s193_s9 }
  0x18   : > { %901 = dma.hbm_to_vmem [thread:$0]  (!%p896_p10), %s194_s9, 512, %s196_s13, [#allocation6], %s1151_s10, %s1151_s10, %s1152_s11  }
  0x19   : > { %p35_p12 = scmp.ge.s32.totalorder %s33_s14, 2  ;;  %p49_p13 = scmp.ne.s32.totalorder %s1136_s17, %s1132_s16 }
  0x1a   : > { %p50_p0 = scmp.eq.s32.totalorder %s1148_s20, 0  ;;  %p912_p3 = scmp.lt.s32.totalorder %s1148_s20, 2 }
  0x1b   : > { %s1388_s14 = smov (%p35_p12, %s33_s14), 0  ;;  %p1266_p7 = por %p1221_p2, %p49_p13 }
  0x1c   : > { %p1260_p5 = por %p50_p0, %p49_p13  ;;  %s37_s28 = ssub.s32 %s1144_s19, %s1388_s14 }
  0x1d   : > { %s209_s29 = sand.u32 1, %s1136_s17   ;;  %p40_p9 = scmp.eq.s32.totalorder %s37_s28, 0 }
  0x1e   : > { %s690_s5 = sshll.u32 %s209_s29, 6  ;;  %s799_s6 = sshll.u32 %s1144_s19, 6 }
  0x1f   : > { %s1275_s7 = scalar_select %p40_p9, %s1136_s17, %s42_s21  }
  0x20   : > { %s221_s10 = scalar_lea.hbm %s1366_s0, %s799_s6  ;;  %s213_s12 = scalar_lea.vmem [#allocation2], %s690_s5 }
  0x21   : > { %s222_s11 = sshll.u32 %s221_s10, 4  ;;  %s224_s13 = sshll.u32 %s213_s12, 4  ;;  %s223_s11 = int_to_ptr.hbm [resolvable:$true] %s222_s11  ;;  %s225_s13 = int_to_ptr.vmem [resolvable:$true] %s224_s13 }
  0x22   : > { %p903_p2 = pnand %p912_p3, %p1260_p5  ;;  %s210_s24 = scalar_lea.sflag [#allocation3], %s209_s29 }
  0x23   : > { %s1154_s1 = smov 128   ;;  %s1155_s3 = smov 8  }
  0x24   : > { %905 = dma.hbm_to_vmem [thread:$0]  (!%p903_p2), %s223_s11, 1024, %s225_s13, %s210_s24, %s1154_s1, %s1154_s1, %s1155_s3  }
  0x25   : > { %236 = sbr.rel (%p1240_p8) target bundleno = 245 (0xf5), region = 36  ;;  %s1287_s21 = sand.u32 (!%p1240_p8), 1, %s1132_s16  }
  0x26   : > { %s694_s28 = sshll.u32 (!%p1240_p8), %s1287_s21, 6  ;;  %s239_s5 = scalar_lea.sflag (!%p1240_p8), [#allocation3], %s1287_s21 }
  0x27   : > { %s1291_s6 = scalar_lea.vmem (!%p1240_p8), [#allocation2], %s694_s28 }
  0x2a   : > { %1115 = dma.done.wait (%p1227_p4), %s239_s5, 1024  }
  0x2b   : > { %1117 = vsyncadd (%p1227_p4), %s239_s5, 4294966272 }
  0x2c   : > { %1119 = dma.done.wait (%p1217_p1), [#allocation6], 2560  }
  0x2d   : > { %1121 = vsyncadd (%p1217_p1), [#allocation6], 4294964736  ;;  %v815_v0 = vld [vmem:[#allocation5 + $0x38] sm:$0xff]  ;;  %v814_v2 = vld [vmem:[#allocation5 + $0x30] sm:$0xff]  ;;  %s697_s23 = sshll.u32 %s1287_s21, 5  ;;  %s824_s30 = sshll.u32 %s1140_s18, 5 }
  0x2e   : > { %v823_v1 = vld [vmem:[#allocation5 + $0x78] sm:$0xff]  ;;  %460 = vmatpush.bf16.msra.mxu0 %v815_v0  ;;  %867 = vmatpush.bf16.msra.mxu2 %v815_v0  ;;  %v822_v3 = vld [vmem:[#allocation5 + $0x70] sm:$0xff]  ;;  %v813_v4 = vld [vmem:[#allocation5 + $0x28] sm:$0xff]  ;;  %s1321_s25 = scalar_lea.vmem [#allocation8], %s697_s23  ;;  %s572_s8 = scalar_lea.hbm %s1370_s4, %s824_s30 }
  0x2f   : > { %489 = vmatpush.bf16.msra.mxu1 %v823_v1  ;;  %875 = vmatpush.bf16.msra.mxu3 %v823_v1  ;;  %v821_v5 = vld [vmem:[#allocation5 + $0x68] sm:$0xff]  ;;  %v812_v6 = vld [vmem:[#allocation5 + $0x20] sm:$0xff]  ;;  %v811_v8 = vld [vmem:[#allocation5 + $0x18] sm:$0xff]  ;;  %s573_s9 = sshll.u32 %s1321_s25, 4  ;;  %s575_s18 = sshll.u32 %s572_s8, 4  ;;  %s574_s9 = int_to_ptr.vmem [resolvable:$true] %s573_s9  ;;  %s576_s18 = int_to_ptr.hbm [resolvable:$true] %s575_s18 }
  0x30   : > { %v820_v7 = vld [vmem:[#allocation5 + $0x60] sm:$0xff]  ;;  %v819_v9 = vld [vmem:[#allocation5 + $0x58] sm:$0xff]  ;;  %v810_v10 = vld [vmem:[#allocation5 + $0x10] sm:$0xff]  ;;  %s559_s10 = scalar_lea.sflag [#allocation4], %s1287_s21  ;;  %s1076_s11 = sshra.s32 %s576_s18, 4  ;;  %s1077_s11 = int_to_ptr.hbm [resolvable:$true] %s1076_s11 }
  0x31   : > { %v818_v11 = vld [vmem:[#allocation5 + $0x50] sm:$0xff]  ;;  %v809_v12 = vld [vmem:[#allocation5 + $0x8] sm:$0xff]  ;;  %v808_v14 = vld [vmem:[#allocation5] sm:$0xff]  ;;  %s1078_s12 = scalar_lea.hbm %s1077_s11, 32  ;;  %s1082_s28 = scalar_lea.hbm %s1370_s4, 64 }
  0x32   : > { %461 = vmatpush.bf16.msra.mxu0 %v814_v2  ;;  %868 = vmatpush.bf16.msra.mxu2 %v814_v2  ;;  %v817_v13 = vld [vmem:[#allocation5 + $0x48] sm:$0xff]  ;;  %v816_v15 = vld [vmem:[#allocation5 + $0x40] sm:$0xff]  ;;  %v708_v28 = vld [vmem:[%s1291_s6 + $0x10] sm:$0xf]  ;;  %p1079_p1 = scmp.ne.s32.totalorder %s1077_s11, %s1078_s12  ;;  %p1083_p10 = scmp.lt.s32.totalorder %s1077_s11, %s1370_s4 }
  0x33   : > { %490 = vmatpush.bf16.msra.mxu1 %v822_v3  ;;  %876 = vmatpush.bf16.msra.mxu3 %v822_v3  ;;  %v700_v16 = vld [vmem:[%s1291_s6] sm:$0xf]  ;;  %v801_v17 = vld [vmem:[%s1291_s6 + $0x4] sm:$0xf0]  ;;  %v800_v20 = vld [vmem:[%s1291_s6 + $0x4] sm:$0xf]  ;;  %p1084_p12 = scmp.lt.s32.totalorder %s1082_s28, %s1078_s12 }
  0x34   : > { %v716_v18 = vld [vmem:[%s1291_s6 + $0x20] sm:$0xf]  ;;  %v805_v19 = vld [vmem:[%s1291_s6 + $0x24] sm:$0xf0]  ;;  %v702_v21 = vld [vmem:[%s1291_s6 + $0x8] sm:$0xf0]  ;;  %v701_v24 = vor.u32 %v801_v17, %v700_v16  ;;  %p1080_p4 = pnand %p1079_p1, %p1266_p7 }
  0x35   : > { %v804_v22 = vld [vmem:[%s1291_s6 + $0x24] sm:$0xf]  ;;  %v718_v23 = vld [vmem:[%s1291_s6 + $0x28] sm:$0xf0]  ;;  %v717_v25 = vor.u32 %v805_v19, %v716_v18  ;;  %v705_v26 = vor.u32 %v800_v20, %v702_v21  ;;  %v803_v29 = vld [vmem:[%s1291_s6 + $0x14] sm:$0xf0]  ;;  %p1085_p13 = por %p1084_p12, %p1083_p10 }
  0x36   : > { %462 = vmatpush.bf16.msra.mxu0 %v813_v4  ;;  %869 = vmatpush.bf16.msra.mxu2 %v813_v4  ;;  %v721_v27 = vor.u32 %v804_v22, %v718_v23  ;;  %v724_v30 = vld [vmem:[%s1291_s6 + $0x30] sm:$0xf]  ;;  %v807_v31 = vld [vmem:[%s1291_s6 + $0x34] sm:$0xf0]  ;;  %v802_v32 = vld [vmem:[%s1291_s6 + $0x14] sm:$0xf]  ;;  %v709_v36 = vor.u32 %v803_v29, %v708_v28  ;;  %p1081_p8 = pneg %p1080_p4 }
  0x37   : > { %491 = vmatpush.bf16.msra.mxu1 %v821_v5  ;;  %877 = vmatpush.bf16.msra.mxu3 %v821_v5  ;;  %v710_v33 = vld [vmem:[%s1291_s6 + $0x18] sm:$0xf0]  ;;  %v806_v34 = vld [vmem:[%s1291_s6 + $0x34] sm:$0xf]  ;;  %v725_v37 = vor.u32 %v807_v31, %v724_v30  ;;  %v321_v40 = vld [vmem:[%s1368_s2] sm:$0x1] }
  0x38   : > { %v726_v35 = vld [vmem:[%s1291_s6 + $0x38] sm:$0xf0]  ;;  %v713_v38 = vor.u32 %v802_v32, %v710_v33  ;;  %v322_v41 = vunpack.c.l.bf16 %v321_v40  ;;  %v826_v46 = vld [vmem:[#allocation7] sm:$0xff]   ;;  %v862_v56 = vld [vmem:[#allocation7 + $0x10] sm:$0xff]   ;;  %p1086_p0 = pnand %p1085_p13, %p1081_p8 }
  0x39   : > { %v729_v39 = vor.u32 %v806_v34, %v726_v35  ;;  %v827_v51 = vunpack.c.l.bf16 %v826_v46  ;;  %v828_v54 = vunpack.c.h.bf16 %v826_v46  ;;  %v835_v60 = vunpack.c.l.bf16 %v862_v56  ;;  %v863_v20 = vld [vmem:[#allocation7 + $0x18] sm:$0xff]  }
  0x3a   : > { %463 = vmatpush.bf16.msra.mxu0 %v812_v6  ;;  %870 = vmatpush.bf16.msra.mxu2 %v812_v6  ;;  %v323_v43 = vperm.slane %v322_v41, 0  ;;  %v836_v2 = vunpack.c.h.bf16 %v862_v56  ;;  %v840_v29 = vunpack.c.h.bf16 %v863_v20 }
  0x3b   : > { %492 = vmatpush.bf16.msra.mxu1 %v820_v7  ;;  %878 = vmatpush.bf16.msra.mxu3 %v820_v7 }
  0x3e   : > { %464 = vmatpush.bf16.msra.mxu0 %v811_v8  ;;  %871 = vmatpush.bf16.msra.mxu2 %v811_v8 }
  0x3f   : > { %493 = vmatpush.bf16.msra.mxu1 %v819_v9  ;;  %879 = vmatpush.bf16.msra.mxu3 %v819_v9 }
  0x42   : > { %465 = vmatpush.bf16.msra.mxu0 %v810_v10  ;;  %872 = vmatpush.bf16.msra.mxu2 %v810_v10  ;;  %v861_v10 = vld [vmem:[#allocation7 + $0x8] sm:$0xff]  }
  0x43   : > { %494 = vmatpush.bf16.msra.mxu1 %v818_v11  ;;  %880 = vmatpush.bf16.msra.mxu3 %v818_v11  ;;  %v832_v17 = vunpack.c.h.bf16 %v861_v10 }
  0x46   : > { %466 = vmatpush.bf16.msra.mxu0 %v809_v12  ;;  %873 = vmatpush.bf16.msra.mxu2 %v809_v12 }
  0x47   : > { %495 = vmatpush.bf16.msra.mxu1 %v817_v13  ;;  %881 = vmatpush.bf16.msra.mxu3 %v817_v13 }
  0x4a   : > { %467 = vmatpush.bf16.msra.mxu0 %v808_v14  ;;  %874 = vmatpush.bf16.msra.mxu2 %v808_v14 }
  0x4b   : > { %496 = vmatpush.bf16.msra.mxu1 %v816_v15  ;;  %882 = vmatpush.bf16.msra.mxu3 %v816_v15  ;;  %v831_v15 = vunpack.c.l.bf16 %v861_v10 }
  0x4d   : > { %468 = vmatmul.bf16.vlgmr.msra.gmra.mxu0 %v701_v24  ;;  %478 = vmatmul.bf16.vlgmr.msra.gmra.mxu2 %v717_v25  ;;  %v839_v24 = vunpack.c.l.bf16 %v863_v20 }
  0x4e   : > { %497 = vmatmul.bf16.vlgmr.msra.gmra.mxu1 %v705_v26  ;;  %507 = vmatmul.bf16.vlgmr.msra.gmra.mxu3 %v721_v27 }
  0x5d   : > { %473 = vmatmul.bf16.gmra.mxu0 %v709_v36  ;;  %483 = vmatmul.bf16.gmra.mxu2 %v725_v37 }
  0x5e   : > { %502 = vmatmul.bf16.gmra.mxu1 %v713_v38  ;;  %512 = vmatmul.bf16.gmra.mxu3 %v729_v39 }
  0xca   : > { %v469_v42 = vpop.f32.mrf.mxu0 }
  0xcb   : > { %v498_v44 = vpop.f32.mrf.mxu1  ;;  %v470_v45 = vadd.f32 %v469_v42, %v323_v43 }
  0xcd   : > { %v499_v50 = vadd.f32 %v498_v44, %v470_v45 }
  0xcf   : > { %v534_v58 = vadd.f32 %v827_v51, %v499_v50 }
  0xd0   : > { %v479_v47 = vpop.f32.mrf.mxu2 }
  0xd1   : > { %v508_v48 = vpop.f32.mrf.mxu3  ;;  %v480_v55 = vadd.f32 %v479_v47, %v323_v43 }
  0xd2   : > { %v471_v49 = vpop.f32.mrf.mxu0 }
  0xd3   : > { %v472_v52 = vadd.f32 %v471_v49, %v323_v43  ;;  %v500_v53 = vpop.f32.mrf.mxu1  ;;  %v509_v62 = vadd.f32 %v508_v48, %v480_v55 }
  0xd5   : > { %v501_v57 = vadd.f32 %v500_v53, %v472_v52  ;;  %v538_v6 = vadd.f32 %v835_v60, %v509_v62 }
  0xd7   : > { %v535_v59 = vadd.f32 %v828_v54, %v501_v57 }
  0xd8   : > { %v481_v61 = vpop.f32.mrf.mxu2 }
  0xd9   : > { %v844_v63 = vpack.c.bf16 %v535_v59, %v534_v58  ;;  %v482_v0 = vadd.f32 %v481_v61, %v323_v43  ;;  %v510_v1 = vpop.f32.mrf.mxu3 }
  0xda   : > { %v474_v3 = vpop.f32.mrf.mxu0 }
  0xdb   : > { %845 = vst [vmem:[%s1321_s25] sm:$0xff] %v844_v63   ;;  %v511_v4 = vadd.f32 %v510_v1, %v482_v0  ;;  %v503_v5 = vpop.f32.mrf.mxu1  ;;  %v475_v9 = vadd.f32 %v474_v3, %v323_v43 }
  0xdd   : > { %v539_v7 = vadd.f32 %v836_v2, %v511_v4  ;;  %v504_v14 = vadd.f32 %v503_v5, %v475_v9 }
  0xdf   : > { %v854_v8 = vpack.c.bf16 %v539_v7, %v538_v6  ;;  %v536_v22 = vadd.f32 %v831_v15, %v504_v14 }
  0xe0   : > { %v484_v11 = vpop.f32.mrf.mxu2 }
  0xe1   : > { %865 = vst [vmem:[%s1321_s25 + $0x10] sm:$0xff] %v854_v8   ;;  %v513_v12 = vpop.f32.mrf.mxu3  ;;  %v485_v19 = vadd.f32 %v484_v11, %v323_v43 }
  0xe2   : > { %v476_v13 = vpop.f32.mrf.mxu0 }
  0xe3   : > { %v477_v16 = vadd.f32 %v476_v13, %v323_v43  ;;  %v505_v18 = vpop.f32.mrf.mxu1  ;;  %v514_v26 = vadd.f32 %v513_v12, %v485_v19 }
  0xe5   : > { %v506_v21 = vadd.f32 %v505_v18, %v477_v16  ;;  %v540_v32 = vadd.f32 %v839_v24, %v514_v26 }
  0xe7   : > { %v537_v23 = vadd.f32 %v832_v17, %v506_v21 }
  0xe8   : > { %v486_v25 = vpop.f32.mrf.mxu2 }
  0xe9   : > { %v849_v27 = vpack.c.bf16 %v537_v23, %v536_v22  ;;  %v487_v28 = vadd.f32 %v486_v25, %v323_v43  ;;  %v515_v30 = vpop.f32.mrf.mxu3 }
  0xeb   : > { %864 = vst [vmem:[%s1321_s25 + $0x8] sm:$0xff] %v849_v27   ;;  %v516_v31 = vadd.f32 %v515_v30, %v487_v28 }
  0xed   : > { %v541_v33 = vadd.f32 %v840_v29, %v516_v31 }
  0xef   : > { %v859_v34 = vpack.c.bf16 %v541_v33, %v540_v32 }
  0xf1   : > { %866 = vst [vmem:[%s1321_s25 + $0x18] sm:$0xff] %v859_v34  }
  0xf2   : > { %1089 = shalt.err (!%p1086_p0)
}
  0xf3   : > { %s1156_s21 = smov 64   ;;  %s1157_s1 = smov 4  }
  0xf4   : > { %893 = dma.vmem_to_hbm [thread:$0]  (%p1266_p7), %s574_s9, 512, %s576_s18, %s559_s10, %s1156_s21, %s1156_s21, %s1157_s1  }
  0xf5 PF: > { %s590_s3 = sand.u32 1, %s1128_s15   ;;  %p907_p3 = pnand %p689_p11, %p1232_p6 }
  0xf6   : > { %s591_s23 = scalar_lea.sflag [#allocation4], %s590_s3 }
  0xf7   : > { %p908_p5 = pneg %p907_p3 }
  0xf9   : > { %1123 = dma.done.wait (%p908_p5), %s591_s23, 512  }
  0xfa   : > { %1125 = vsyncadd (%p908_p5), %s591_s23, 4294966784  ;;  %s21_s20 = sadd.s32 1, %s1148_s20   ;;  %s1382_s15 = smov %s1132_s16 }
  0xfb   : > { %p18_p9 = scmp.ge.s32.totalorder %s21_s20, 4   ;;  %s1383_s16 = smov %s1136_s17 }
  0xfc   : > { %s1384_s17 = smov %s1275_s7  ;;  %s1385_s18 = smov %s1144_s19 }
  0xfd   : > { %s1386_s19 = smov %s1388_s14  ;;  %20 = sbr.rel (!%p18_p9) target bundleno = 10 (0xa), region = 90 }
 0x102   :  { %597 = vsyncpa [#allocation3], 1 }
 0x103   :  { %599 = vsyncpa [#allocation3 + $0x1], 1 }
 0x104   :  { %600 = vsyncpa [#allocation6], 1 }
 0x105   :  { %601 = vsyncpa [#allocation4], 1 }
 0x106   :  { %603 = vsyncpa [#allocation4 + $0x1], 1 }

</bundles_post_ra>
